<compile_context>
chip_gen: v7x
topology: tpu7x:2x2x1
jax: 0.10.0
libtpu: 0.0.40
codegen_flags: <defaults>
</compile_context>

<pallas_src>
import jax
import jax.numpy as jnp
from jax.experimental import pallas as pl
from jax.experimental.pallas import tpu as pltpu

EPS = 1e-5

IN_CH = 4
FEAT = 64       # encoder feature dim
OUT_DIM = 128   # projection / z dim
PRED_DIM = 64   # predictor hidden dim


# ----------------------------- fused Pallas kernel ------------------------------

def simsiam_fused_kernel(cols_ref, conv_w_ref, conv_b_ref, pool_ref, avg_ref,
                         p1w_ref, p1g_ref, p1b_ref,
                         p2w_ref, p2g_ref, p2b_ref,
                         p3w_ref, p3b_ref,
                         q1w_ref, q1g_ref, q1b_ref,
                         q2w_ref, q2b_ref,
                         z_ref, p_ref):
    f32 = jnp.float32
    avg = avg_ref[...]  # (2N, 2N) per-view row-averaging matrix

    def batchnorm(y, gamma=None, beta=None, relu=False):
        # Training-mode BatchNorm1d with PER-VIEW batch statistics (biased variance).
        # `avg @ y` broadcasts each view's mean to that view's rows, so results match
        # running the encoder / predictor separately on x1 and x2.
        mean = jnp.dot(avg, y, preferred_element_type=f32)
        diff = y - mean
        var = jnp.dot(avg, diff * diff, preferred_element_type=f32)
        yn = diff * jax.lax.rsqrt(var + EPS)          # rsqrt -> EUP slot
        if gamma is not None:
            yn = yn * gamma + beta
        if relu:
            yn = jnp.maximum(yn, 0.0)
        return yn

    # conv3x3(+bias)+ReLU as one im2col matmul; GAP fused via pooling matmul.
    y = jnp.dot(cols_ref[...], conv_w_ref[...], preferred_element_type=f32)
    y = jnp.maximum(y + conv_b_ref[...], 0.0)                         # (2N*H*W, FEAT)
    feat = jnp.dot(pool_ref[...], y, preferred_element_type=f32)      # (2N, FEAT)

    # projection head: Linear(no bias)+BN+ReLU, Linear(no bias)+BN+ReLU,
    #                  Linear(+bias), BN(affine=False)
    h = batchnorm(jnp.dot(feat, p1w_ref[...], preferred_element_type=f32),
                  p1g_ref[...], p1b_ref[...], relu=True)
    h = batchnorm(jnp.dot(h, p2w_ref[...], preferred_element_type=f32),
                  p2g_ref[...], p2b_ref[...], relu=True)
    z = jnp.dot(h, p3w_ref[...], preferred_element_type=f32) + p3b_ref[...]
    z = batchnorm(z)                                                   # affine=False
    z_ref[...] = z                                                     # (2N, 128) lane-dense

    # predictor: Linear(no bias)+BN+ReLU, Linear(+bias)
    g = batchnorm(jnp.dot(z, q1w_ref[...], preferred_element_type=f32),
                  q1g_ref[...], q1b_ref[...], relu=True)
    p_ref[...] = jnp.dot(g, q2w_ref[...], preferred_element_type=f32) + q2b_ref[...]


# ----------------------------- pallas_call glue ----------------------------------

def _spec(shape):
    n = len(shape)
    return pl.BlockSpec(shape, lambda i, n=n: (0,) * n)


def simsiam_fused_call(cols, pool, avg, w):
    two_n = pool.shape[0]
    inputs = [cols, w["conv_w"], w["conv_b"], pool, avg,
              w["proj1_w"], w["proj1_g"], w["proj1_b"],
              w["proj2_w"], w["proj2_g"], w["proj2_b"],
              w["proj3_w"], w["proj3_b"],
              w["pred1_w"], w["pred1_g"], w["pred1_b"],
              w["pred2_w"], w["pred2_b"]]
    out_shape = (jax.ShapeDtypeStruct((two_n, OUT_DIM), jnp.float32),
                 jax.ShapeDtypeStruct((two_n, OUT_DIM), jnp.float32))
    return pl.pallas_call(
        simsiam_fused_kernel,
        grid=(1,),
        in_specs=[_spec(x.shape) for x in inputs],
        out_specs=(_spec((two_n, OUT_DIM)), _spec((two_n, OUT_DIM))),
        out_shape=out_shape,
        compiler_params=pltpu.CompilerParams(dimension_semantics=("arbitrary",)),
    )(*inputs)


# ----------------------------- model definition ----------------------------------

def init_params(key):
    # PyTorch-layout parameters (Linear weight (out, in), conv weight (out, in, kh, kw)).
    ks = jax.random.split(key, 8)
    s = 0.05
    return {
        "conv_w": jax.random.normal(ks[0], (FEAT, IN_CH, 3, 3), jnp.float32) * s,
        "conv_b": jax.random.normal(ks[1], (FEAT,), jnp.float32) * s,
        "proj1_w": jax.random.normal(ks[2], (FEAT, FEAT), jnp.float32) * s,
        "proj1_g": jnp.ones((FEAT,), jnp.float32),
        "proj1_b": jnp.zeros((FEAT,), jnp.float32),
        "proj2_w": jax.random.normal(ks[3], (FEAT, FEAT), jnp.float32) * s,
        "proj2_g": jnp.ones((FEAT,), jnp.float32),
        "proj2_b": jnp.zeros((FEAT,), jnp.float32),
        "proj3_w": jax.random.normal(ks[4], (OUT_DIM, FEAT), jnp.float32) * s,
        "proj3_b": jax.random.normal(ks[5], (OUT_DIM,), jnp.float32) * s,
        "pred1_w": jax.random.normal(ks[6], (PRED_DIM, OUT_DIM), jnp.float32) * s,
        "pred1_g": jnp.ones((PRED_DIM,), jnp.float32),
        "pred1_b": jnp.zeros((PRED_DIM,), jnp.float32),
        "pred2_w": jax.random.normal(ks[7], (OUT_DIM, PRED_DIM), jnp.float32) * s,
        "pred2_b": jnp.zeros((OUT_DIM,), jnp.float32),
    }


def prepare_params(p):
    # One-time layout transform (done at init, NOT per forward):
    #   Linear weights stored as (in, out); conv weight as (9*C, FEAT) matching the
    #   NHWC tap-major / channel-minor im2col layout; biases / BN params as (1, F).
    return {
        "conv_w": p["conv_w"].transpose(2, 3, 1, 0).reshape(9 * IN_CH, FEAT),
        "conv_b": p["conv_b"].reshape(1, FEAT),
        "proj1_w": p["proj1_w"].T, "proj1_g": p["proj1_g"].reshape(1, -1),
        "proj1_b": p["proj1_b"].reshape(1, -1),
        "proj2_w": p["proj2_w"].T, "proj2_g": p["proj2_g"].reshape(1, -1),
        "proj2_b": p["proj2_b"].reshape(1, -1),
        "proj3_w": p["proj3_w"].T, "proj3_b": p["proj3_b"].reshape(1, -1),
        "pred1_w": p["pred1_w"].T, "pred1_g": p["pred1_g"].reshape(1, -1),
        "pred1_b": p["pred1_b"].reshape(1, -1),
        "pred2_w": p["pred2_w"].T, "pred2_b": p["pred2_b"].reshape(1, -1),
    }


def im2col_3x3_same_nhwc(x):
    # x: (B, H, W, C) NHWC, 3x3, stride 1, pad 1.  Last dim is tap-major (kh, kw),
    # channel-minor -- matches conv_w.transpose(2,3,1,0).reshape(9*C, FEAT).
    B, H, W, C = x.shape
    xp = jnp.pad(x, ((0, 0), (1, 1), (1, 1), (0, 0)))
    cols = jnp.concatenate(
        [xp[:, dh:dh + H, dw:dw + W, :] for dh in range(3) for dw in range(3)],
        axis=-1)                                   # (B, H, W, 9*C), no major-dim permute
    return cols.reshape(B * H * W, 9 * C)


@jax.jit
def simsiam_forward(kernel_params, x1, x2):
    N, C, H, W = x1.shape
    # Batch the two views; convert NCHW -> NHWC once.
    x = jnp.concatenate([x1, x2], axis=0).transpose(0, 2, 3, 1)        # (2N, H, W, C)
    cols = im2col_3x3_same_nhwc(x)                                     # (2N*H*W, 9*C)
    # Constant helper matrices (constant-folded by XLA): GAP as a pooling matmul and
    # per-view BN row-averaging.
    pool = jnp.kron(jnp.eye(2 * N, dtype=jnp.float32),
                    jnp.full((1, H * W), 1.0 / (H * W), jnp.float32))  # (2N, 2N*H*W)
    avg = jnp.kron(jnp.eye(2, dtype=jnp.float32),
                   jnp.full((N, N), 1.0 / N, jnp.float32))             # (2N, 2N)
    z, p = simsiam_fused_call(cols, pool, avg, kernel_params)
    z1, z2 = z[:N], z[N:]
    p1, p2 = p[:N], p[N:]
    return p1, p2, jax.lax.stop_gradient(z1), jax.lax.stop_gradient(z2)


# --------------------------------- main -------------------------------------------

if __name__ == "__main__":
    key = jax.random.PRNGKey(0)
    kp, k1, k2 = jax.random.split(key, 3)
    params = prepare_params(init_params(kp))

    N, C, H, W = 2, IN_CH, 16, 16
    x1 = jax.random.normal(k1, (N, C, H, W), jnp.float32)
    x2 = jax.random.normal(k2, (N, C, H, W), jnp.float32)

    p1, p2, z1, z2 = simsiam_forward(params, x1, x2)
    jax.block_until_ready((p1, p2, z1, z2))

    assert p1.shape == (N, OUT_DIM) and p2.shape == (N, OUT_DIM)
    assert z1.shape == (N, OUT_DIM) and z2.shape == (N, OUT_DIM)
    assert all(bool(jnp.all(jnp.isfinite(t))) for t in (p1, p2, z1, z2))
    print("KERNEL_OK")
</pallas_src>

<mosaic_0001>
module attributes {stable_mosaic.version = 11 : i64} {
  func.func @simsiam_fused_kernel(%arg0: i32, %arg1: memref<1024x36xf32, #tpu.memory_space<vmem>>, %arg2: memref<36x64xf32, #tpu.memory_space<vmem>>, %arg3: memref<1x64xf32, #tpu.memory_space<vmem>>, %arg4: memref<4x1024xf32, #tpu.memory_space<vmem>>, %arg5: memref<4x4xf32, #tpu.memory_space<vmem>>, %arg6: memref<64x64xf32, #tpu.memory_space<vmem>>, %arg7: memref<1x64xf32, #tpu.memory_space<vmem>>, %arg8: memref<1x64xf32, #tpu.memory_space<vmem>>, %arg9: memref<64x64xf32, #tpu.memory_space<vmem>>, %arg10: memref<1x64xf32, #tpu.memory_space<vmem>>, %arg11: memref<1x64xf32, #tpu.memory_space<vmem>>, %arg12: memref<64x128xf32, #tpu.memory_space<vmem>>, %arg13: memref<1x128xf32, #tpu.memory_space<vmem>>, %arg14: memref<128x64xf32, #tpu.memory_space<vmem>>, %arg15: memref<1x64xf32, #tpu.memory_space<vmem>>, %arg16: memref<1x64xf32, #tpu.memory_space<vmem>>, %arg17: memref<64x128xf32, #tpu.memory_space<vmem>>, %arg18: memref<1x128xf32, #tpu.memory_space<vmem>>, %arg19: memref<4x128xf32, #tpu.memory_space<vmem>>, %arg20: memref<4x128xf32, #tpu.memory_space<vmem>>) attributes {dimension_semantics = [#tpu.dimension_semantics<arbitrary>], iteration_bounds = array<i64: 1>, scalar_prefetch = 0 : i64, scratch_operands = 0 : i64, tpu.core_type = #tpu.core_type<tc>, window_params = [{pipeline_mode = #tpu.pipeline_mode<synchronous>, transform_indices = @transform_0, window_bounds = array<i64: 1024, 36>}, {pipeline_mode = #tpu.pipeline_mode<synchronous>, transform_indices = @transform_1, window_bounds = array<i64: 36, 64>}, {pipeline_mode = #tpu.pipeline_mode<synchronous>, transform_indices = @transform_2, window_bounds = array<i64: 1, 64>}, {pipeline_mode = #tpu.pipeline_mode<synchronous>, transform_indices = @transform_3, window_bounds = array<i64: 4, 1024>}, {pipeline_mode = #tpu.pipeline_mode<synchronous>, transform_indices = @transform_4, window_bounds = array<i64: 4, 4>}, {pipeline_mode = #tpu.pipeline_mode<synchronous>, transform_indices = @transform_5, window_bounds = array<i64: 64, 64>}, {pipeline_mode = #tpu.pipeline_mode<synchronous>, transform_indices = @transform_6, window_bounds = array<i64: 1, 64>}, {pipeline_mode = #tpu.pipeline_mode<synchronous>, transform_indices = @transform_7, window_bounds = array<i64: 1, 64>}, {pipeline_mode = #tpu.pipeline_mode<synchronous>, transform_indices = @transform_8, window_bounds = array<i64: 64, 64>}, {pipeline_mode = #tpu.pipeline_mode<synchronous>, transform_indices = @transform_9, window_bounds = array<i64: 1, 64>}, {pipeline_mode = #tpu.pipeline_mode<synchronous>, transform_indices = @transform_10, window_bounds = array<i64: 1, 64>}, {pipeline_mode = #tpu.pipeline_mode<synchronous>, transform_indices = @transform_11, window_bounds = array<i64: 64, 128>}, {pipeline_mode = #tpu.pipeline_mode<synchronous>, transform_indices = @transform_12, window_bounds = array<i64: 1, 128>}, {pipeline_mode = #tpu.pipeline_mode<synchronous>, transform_indices = @transform_13, window_bounds = array<i64: 128, 64>}, {pipeline_mode = #tpu.pipeline_mode<synchronous>, transform_indices = @transform_14, window_bounds = array<i64: 1, 64>}, {pipeline_mode = #tpu.pipeline_mode<synchronous>, transform_indices = @transform_15, window_bounds = array<i64: 1, 64>}, {pipeline_mode = #tpu.pipeline_mode<synchronous>, transform_indices = @transform_16, window_bounds = array<i64: 64, 128>}, {pipeline_mode = #tpu.pipeline_mode<synchronous>, transform_indices = @transform_17, window_bounds = array<i64: 1, 128>}, {pipeline_mode = #tpu.pipeline_mode<synchronous>, transform_indices = @transform_18, window_bounds = array<i64: 4, 128>}, {pipeline_mode = #tpu.pipeline_mode<synchronous>, transform_indices = @transform_19, window_bounds = array<i64: 4, 128>}]} {
    %c0 = arith.constant 0 : index
    %c0_0 = arith.constant 0 : index
    %0 = vector.load %arg5[%c0, %c0_0] : memref<4x4xf32, #tpu.memory_space<vmem>>, vector<4x4xf32>
    %c0_1 = arith.constant 0 : index
    %c0_2 = arith.constant 0 : index
    %1 = vector.load %arg1[%c0_1, %c0_2] : memref<1024x36xf32, #tpu.memory_space<vmem>>, vector<1024x36xf32>
    %c0_3 = arith.constant 0 : index
    %c0_4 = arith.constant 0 : index
    %2 = vector.load %arg2[%c0_3, %c0_4] : memref<36x64xf32, #tpu.memory_space<vmem>>, vector<36x64xf32>
    %cst = arith.constant dense<0.000000e+00> : vector<1024x64xf32>
    %3 = tpu.matmul %1, %2, %cst {dimension_numbers = #tpu.dot_dimension_numbers<[1], [0], [0], [1], [0, 0, 1, 1], [], []>} : vector<1024x36xf32>, vector<36x64xf32>, vector<1024x64xf32> -> vector<1024x64xf32>
    %c0_5 = arith.constant 0 : index
    %c0_6 = arith.constant 0 : index
    %4 = vector.load %arg3[%c0_5, %c0_6] : memref<1x64xf32, #tpu.memory_space<vmem>>, vector<1x64xf32>
    %5 = vector.broadcast %4 : vector<1x64xf32> to vector<1024x64xf32>
    %6 = arith.addf %3, %5 : vector<1024x64xf32>
    %cst_7 = arith.constant 0.000000e+00 : f32
    %7 = vector.broadcast %cst_7 : f32 to vector<1024x64xf32>
    %8 = arith.maximumf %6, %7 : vector<1024x64xf32>
    %c0_8 = arith.constant 0 : index
    %c0_9 = arith.constant 0 : index
    %9 = vector.load %arg4[%c0_8, %c0_9] : memref<4x1024xf32, #tpu.memory_space<vmem>>, vector<4x1024xf32>
    %cst_10 = arith.constant dense<0.000000e+00> : vector<4x64xf32>
    %10 = tpu.matmul %9, %8, %cst_10 {dimension_numbers = #tpu.dot_dimension_numbers<[1], [0], [0], [1], [0, 0, 1, 1], [], []>} : vector<4x1024xf32>, vector<1024x64xf32>, vector<4x64xf32> -> vector<4x64xf32>
    %c0_11 = arith.constant 0 : index
    %c0_12 = arith.constant 0 : index
    %11 = vector.load %arg6[%c0_11, %c0_12] : memref<64x64xf32, #tpu.memory_space<vmem>>, vector<64x64xf32>
    %cst_13 = arith.constant dense<0.000000e+00> : vector<4x64xf32>
    %12 = tpu.matmul %10, %11, %cst_13 {dimension_numbers = #tpu.dot_dimension_numbers<[1], [0], [0], [1], [0, 0, 1, 1], [], []>} : vector<4x64xf32>, vector<64x64xf32>, vector<4x64xf32> -> vector<4x64xf32>
    %c0_14 = arith.constant 0 : index
    %c0_15 = arith.constant 0 : index
    %13 = vector.load %arg7[%c0_14, %c0_15] : memref<1x64xf32, #tpu.memory_space<vmem>>, vector<1x64xf32>
    %c0_16 = arith.constant 0 : index
    %c0_17 = arith.constant 0 : index
    %14 = vector.load %arg8[%c0_16, %c0_17] : memref<1x64xf32, #tpu.memory_space<vmem>>, vector<1x64xf32>
    %cst_18 = arith.constant dense<0.000000e+00> : vector<4x64xf32>
    %15 = tpu.matmul %0, %12, %cst_18 {dimension_numbers = #tpu.dot_dimension_numbers<[1], [0], [0], [1], [0, 0, 1, 1], [], []>} : vector<4x4xf32>, vector<4x64xf32>, vector<4x64xf32> -> vector<4x64xf32>
    %16 = arith.subf %12, %15 : vector<4x64xf32>
    %17 = arith.mulf %16, %16 : vector<4x64xf32>
    %cst_19 = arith.constant dense<0.000000e+00> : vector<4x64xf32>
    %18 = tpu.matmul %0, %17, %cst_19 {dimension_numbers = #tpu.dot_dimension_numbers<[1], [0], [0], [1], [0, 0, 1, 1], [], []>} : vector<4x4xf32>, vector<4x64xf32>, vector<4x64xf32> -> vector<4x64xf32>
    %cst_20 = arith.constant 9.99999974E-6 : f32
    %19 = vector.broadcast %cst_20 : f32 to vector<4x64xf32>
    %20 = arith.addf %18, %19 : vector<4x64xf32>
    %21 = math.rsqrt %20 : vector<4x64xf32>
    %22 = arith.mulf %16, %21 : vector<4x64xf32>
    %23 = vector.broadcast %13 : vector<1x64xf32> to vector<4x64xf32>
    %24 = arith.mulf %22, %23 : vector<4x64xf32>
    %25 = vector.broadcast %14 : vector<1x64xf32> to vector<4x64xf32>
    %26 = arith.addf %24, %25 : vector<4x64xf32>
    %cst_21 = arith.constant 0.000000e+00 : f32
    %27 = vector.broadcast %cst_21 : f32 to vector<4x64xf32>
    %28 = arith.maximumf %26, %27 : vector<4x64xf32>
    %c0_22 = arith.constant 0 : index
    %c0_23 = arith.constant 0 : index
    %29 = vector.load %arg9[%c0_22, %c0_23] : memref<64x64xf32, #tpu.memory_space<vmem>>, vector<64x64xf32>
    %cst_24 = arith.constant dense<0.000000e+00> : vector<4x64xf32>
    %30 = tpu.matmul %28, %29, %cst_24 {dimension_numbers = #tpu.dot_dimension_numbers<[1], [0], [0], [1], [0, 0, 1, 1], [], []>} : vector<4x64xf32>, vector<64x64xf32>, vector<4x64xf32> -> vector<4x64xf32>
    %c0_25 = arith.constant 0 : index
    %c0_26 = arith.constant 0 : index
    %31 = vector.load %arg10[%c0_25, %c0_26] : memref<1x64xf32, #tpu.memory_space<vmem>>, vector<1x64xf32>
    %c0_27 = arith.constant 0 : index
    %c0_28 = arith.constant 0 : index
    %32 = vector.load %arg11[%c0_27, %c0_28] : memref<1x64xf32, #tpu.memory_space<vmem>>, vector<1x64xf32>
    %cst_29 = arith.constant dense<0.000000e+00> : vector<4x64xf32>
    %33 = tpu.matmul %0, %30, %cst_29 {dimension_numbers = #tpu.dot_dimension_numbers<[1], [0], [0], [1], [0, 0, 1, 1], [], []>} : vector<4x4xf32>, vector<4x64xf32>, vector<4x64xf32> -> vector<4x64xf32>
    %34 = arith.subf %30, %33 : vector<4x64xf32>
    %35 = arith.mulf %34, %34 : vector<4x64xf32>
    %cst_30 = arith.constant dense<0.000000e+00> : vector<4x64xf32>
    %36 = tpu.matmul %0, %35, %cst_30 {dimension_numbers = #tpu.dot_dimension_numbers<[1], [0], [0], [1], [0, 0, 1, 1], [], []>} : vector<4x4xf32>, vector<4x64xf32>, vector<4x64xf32> -> vector<4x64xf32>
    %cst_31 = arith.constant 9.99999974E-6 : f32
    %37 = vector.broadcast %cst_31 : f32 to vector<4x64xf32>
    %38 = arith.addf %36, %37 : vector<4x64xf32>
    %39 = math.rsqrt %38 : vector<4x64xf32>
    %40 = arith.mulf %34, %39 : vector<4x64xf32>
    %41 = vector.broadcast %31 : vector<1x64xf32> to vector<4x64xf32>
    %42 = arith.mulf %40, %41 : vector<4x64xf32>
    %43 = vector.broadcast %32 : vector<1x64xf32> to vector<4x64xf32>
    %44 = arith.addf %42, %43 : vector<4x64xf32>
    %cst_32 = arith.constant 0.000000e+00 : f32
    %45 = vector.broadcast %cst_32 : f32 to vector<4x64xf32>
    %46 = arith.maximumf %44, %45 : vector<4x64xf32>
    %c0_33 = arith.constant 0 : index
    %c0_34 = arith.constant 0 : index
    %47 = vector.load %arg12[%c0_33, %c0_34] : memref<64x128xf32, #tpu.memory_space<vmem>>, vector<64x128xf32>
    %cst_35 = arith.constant dense<0.000000e+00> : vector<4x128xf32>
    %48 = tpu.matmul %46, %47, %cst_35 {dimension_numbers = #tpu.dot_dimension_numbers<[1], [0], [0], [1], [0, 0, 1, 1], [], []>} : vector<4x64xf32>, vector<64x128xf32>, vector<4x128xf32> -> vector<4x128xf32>
    %c0_36 = arith.constant 0 : index
    %c0_37 = arith.constant 0 : index
    %49 = vector.load %arg13[%c0_36, %c0_37] : memref<1x128xf32, #tpu.memory_space<vmem>>, vector<1x128xf32>
    %50 = vector.broadcast %49 : vector<1x128xf32> to vector<4x128xf32>
    %51 = arith.addf %48, %50 : vector<4x128xf32>
    %cst_38 = arith.constant dense<0.000000e+00> : vector<4x128xf32>
    %52 = tpu.matmul %0, %51, %cst_38 {dimension_numbers = #tpu.dot_dimension_numbers<[1], [0], [0], [1], [0, 0, 1, 1], [], []>} : vector<4x4xf32>, vector<4x128xf32>, vector<4x128xf32> -> vector<4x128xf32>
    %53 = arith.subf %51, %52 : vector<4x128xf32>
    %54 = arith.mulf %53, %53 : vector<4x128xf32>
    %cst_39 = arith.constant dense<0.000000e+00> : vector<4x128xf32>
    %55 = tpu.matmul %0, %54, %cst_39 {dimension_numbers = #tpu.dot_dimension_numbers<[1], [0], [0], [1], [0, 0, 1, 1], [], []>} : vector<4x4xf32>, vector<4x128xf32>, vector<4x128xf32> -> vector<4x128xf32>
    %cst_40 = arith.constant 9.99999974E-6 : f32
    %56 = vector.broadcast %cst_40 : f32 to vector<4x128xf32>
    %57 = arith.addf %55, %56 : vector<4x128xf32>
    %58 = math.rsqrt %57 : vector<4x128xf32>
    %59 = arith.mulf %53, %58 : vector<4x128xf32>
    %c0_41 = arith.constant 0 : index
    %c0_42 = arith.constant 0 : index
    %60 = vector.load %arg19[%c0_41, %c0_42] : memref<4x128xf32, #tpu.memory_space<vmem>>, vector<4x128xf32>
    tpu.vector_store %arg19[%c0_41, %c0_42], %59 {strides = array<i32>} : memref<4x128xf32, #tpu.memory_space<vmem>>, vector<4x128xf32>,
    %c0_43 = arith.constant 0 : index
    %c0_44 = arith.constant 0 : index
    %61 = vector.load %arg14[%c0_43, %c0_44] : memref<128x64xf32, #tpu.memory_space<vmem>>, vector<128x64xf32>
    %cst_45 = arith.constant dense<0.000000e+00> : vector<4x64xf32>
    %62 = tpu.matmul %59, %61, %cst_45 {dimension_numbers = #tpu.dot_dimension_numbers<[1], [0], [0], [1], [0, 0, 1, 1], [], []>} : vector<4x128xf32>, vector<128x64xf32>, vector<4x64xf32> -> vector<4x64xf32>
    %c0_46 = arith.constant 0 : index
    %c0_47 = arith.constant 0 : index
    %63 = vector.load %arg15[%c0_46, %c0_47] : memref<1x64xf32, #tpu.memory_space<vmem>>, vector<1x64xf32>
    %c0_48 = arith.constant 0 : index
    %c0_49 = arith.constant 0 : index
    %64 = vector.load %arg16[%c0_48, %c0_49] : memref<1x64xf32, #tpu.memory_space<vmem>>, vector<1x64xf32>
    %cst_50 = arith.constant dense<0.000000e+00> : vector<4x64xf32>
    %65 = tpu.matmul %0, %62, %cst_50 {dimension_numbers = #tpu.dot_dimension_numbers<[1], [0], [0], [1], [0, 0, 1, 1], [], []>} : vector<4x4xf32>, vector<4x64xf32>, vector<4x64xf32> -> vector<4x64xf32>
    %66 = arith.subf %62, %65 : vector<4x64xf32>
    %67 = arith.mulf %66, %66 : vector<4x64xf32>
    %cst_51 = arith.constant dense<0.000000e+00> : vector<4x64xf32>
    %68 = tpu.matmul %0, %67, %cst_51 {dimension_numbers = #tpu.dot_dimension_numbers<[1], [0], [0], [1], [0, 0, 1, 1], [], []>} : vector<4x4xf32>, vector<4x64xf32>, vector<4x64xf32> -> vector<4x64xf32>
    %cst_52 = arith.constant 9.99999974E-6 : f32
    %69 = vector.broadcast %cst_52 : f32 to vector<4x64xf32>
    %70 = arith.addf %68, %69 : vector<4x64xf32>
    %71 = math.rsqrt %70 : vector<4x64xf32>
    %72 = arith.mulf %66, %71 : vector<4x64xf32>
    %73 = vector.broadcast %63 : vector<1x64xf32> to vector<4x64xf32>
    %74 = arith.mulf %72, %73 : vector<4x64xf32>
    %75 = vector.broadcast %64 : vector<1x64xf32> to vector<4x64xf32>
    %76 = arith.addf %74, %75 : vector<4x64xf32>
    %cst_53 = arith.constant 0.000000e+00 : f32
    %77 = vector.broadcast %cst_53 : f32 to vector<4x64xf32>
    %78 = arith.maximumf %76, %77 : vector<4x64xf32>
    %c0_54 = arith.constant 0 : index
    %c0_55 = arith.constant 0 : index
    %79 = vector.load %arg17[%c0_54, %c0_55] : memref<64x128xf32, #tpu.memory_space<vmem>>, vector<64x128xf32>
    %cst_56 = arith.constant dense<0.000000e+00> : vector<4x128xf32>
    %80 = tpu.matmul %78, %79, %cst_56 {dimension_numbers = #tpu.dot_dimension_numbers<[1], [0], [0], [1], [0, 0, 1, 1], [], []>} : vector<4x64xf32>, vector<64x128xf32>, vector<4x128xf32> -> vector<4x128xf32>
    %c0_57 = arith.constant 0 : index
    %c0_58 = arith.constant 0 : index
    %81 = vector.load %arg18[%c0_57, %c0_58] : memref<1x128xf32, #tpu.memory_space<vmem>>, vector<1x128xf32>
    %82 = vector.broadcast %81 : vector<1x128xf32> to vector<4x128xf32>
    %83 = arith.addf %80, %82 : vector<4x128xf32>
    %c0_59 = arith.constant 0 : index
    %c0_60 = arith.constant 0 : index
    %84 = vector.load %arg20[%c0_59, %c0_60] : memref<4x128xf32, #tpu.memory_space<vmem>>, vector<4x128xf32>
    tpu.vector_store %arg20[%c0_59, %c0_60], %83 {strides = array<i32>} : memref<4x128xf32, #tpu.memory_space<vmem>>, vector<4x128xf32>,
    return
  }
  func.func @transform_0(%arg0: i32) -> (i32, i32) {
    %c0_i32 = arith.constant 0 : i32
    %c0_i32_0 = arith.constant 0 : i32
    %c0_i32_1 = arith.constant 0 : i32
    return %c0_i32, %c0_i32_0 : i32, i32
  }
  func.func @transform_1(%arg0: i32) -> (i32, i32) {
    %c0_i32 = arith.constant 0 : i32
    %c0_i32_0 = arith.constant 0 : i32
    %c0_i32_1 = arith.constant 0 : i32
    return %c0_i32, %c0_i32_0 : i32, i32
  }
  func.func @transform_2(%arg0: i32) -> (i32, i32) {
    %c0_i32 = arith.constant 0 : i32
    %c0_i32_0 = arith.constant 0 : i32
    %c0_i32_1 = arith.constant 0 : i32
    return %c0_i32, %c0_i32_0 : i32, i32
  }
  func.func @transform_3(%arg0: i32) -> (i32, i32) {
    %c0_i32 = arith.constant 0 : i32
    %c0_i32_0 = arith.constant 0 : i32
    %c0_i32_1 = arith.constant 0 : i32
    return %c0_i32, %c0_i32_0 : i32, i32
  }
  func.func @transform_4(%arg0: i32) -> (i32, i32) {
    %c0_i32 = arith.constant 0 : i32
    %c0_i32_0 = arith.constant 0 : i32
    %c0_i32_1 = arith.constant 0 : i32
    return %c0_i32, %c0_i32_0 : i32, i32
  }
  func.func @transform_5(%arg0: i32) -> (i32, i32) {
    %c0_i32 = arith.constant 0 : i32
    %c0_i32_0 = arith.constant 0 : i32
    %c0_i32_1 = arith.constant 0 : i32
    return %c0_i32, %c0_i32_0 : i32, i32
  }
  func.func @transform_6(%arg0: i32) -> (i32, i32) {
    %c0_i32 = arith.constant 0 : i32
    %c0_i32_0 = arith.constant 0 : i32
    %c0_i32_1 = arith.constant 0 : i32
    return %c0_i32, %c0_i32_0 : i32, i32
  }
  func.func @transform_7(%arg0: i32) -> (i32, i32) {
    %c0_i32 = arith.constant 0 : i32
    %c0_i32_0 = arith.constant 0 : i32
    %c0_i32_1 = arith.constant 0 : i32
    return %c0_i32, %c0_i32_0 : i32, i32
  }
  func.func @transform_8(%arg0: i32) -> (i32, i32) {
    %c0_i32 = arith.constant 0 : i32
    %c0_i32_0 = arith.constant 0 : i32
    %c0_i32_1 = arith.constant 0 : i32
    return %c0_i32, %c0_i32_0 : i32, i32
  }
  func.func @transform_9(%arg0: i32) -> (i32, i32) {
    %c0_i32 = arith.constant 0 : i32
    %c0_i32_0 = arith.constant 0 : i32
    %c0_i32_1 = arith.constant 0 : i32
    return %c0_i32, %c0_i32_0 : i32, i32
  }
  func.func @transform_10(%arg0: i32) -> (i32, i32) {
    %c0_i32 = arith.constant 0 : i32
    %c0_i32_0 = arith.constant 0 : i32
    %c0_i32_1 = arith.constant 0 : i32
    return %c0_i32, %c0_i32_0 : i32, i32
  }
  func.func @transform_11(%arg0: i32) -> (i32, i32) {
    %c0_i32 = arith.constant 0 : i32
    %c0_i32_0 = arith.constant 0 : i32
    %c0_i32_1 = arith.constant 0 : i32
    return %c0_i32, %c0_i32_0 : i32, i32
  }
  func.func @transform_12(%arg0: i32) -> (i32, i32) {
    %c0_i32 = arith.constant 0 : i32
    %c0_i32_0 = arith.constant 0 : i32
    %c0_i32_1 = arith.constant 0 : i32
    return %c0_i32, %c0_i32_0 : i32, i32
  }
  func.func @transform_13(%arg0: i32) -> (i32, i32) {
    %c0_i32 = arith.constant 0 : i32
    %c0_i32_0 = arith.constant 0 : i32
    %c0_i32_1 = arith.constant 0 : i32
    return %c0_i32, %c0_i32_0 : i32, i32
  }
  func.func @transform_14(%arg0: i32) -> (i32, i32) {
    %c0_i32 = arith.constant 0 : i32
    %c0_i32_0 = arith.constant 0 : i32
    %c0_i32_1 = arith.constant 0 : i32
    return %c0_i32, %c0_i32_0 : i32, i32
  }
  func.func @transform_15(%arg0: i32) -> (i32, i32) {
    %c0_i32 = arith.constant 0 : i32
    %c0_i32_0 = arith.constant 0 : i32
    %c0_i32_1 = arith.constant 0 : i32
    return %c0_i32, %c0_i32_0 : i32, i32
  }
  func.func @transform_16(%arg0: i32) -> (i32, i32) {
    %c0_i32 = arith.constant 0 : i32
    %c0_i32_0 = arith.constant 0 : i32
    %c0_i32_1 = arith.constant 0 : i32
    return %c0_i32, %c0_i32_0 : i32, i32
  }
  func.func @transform_17(%arg0: i32) -> (i32, i32) {
    %c0_i32 = arith.constant 0 : i32
    %c0_i32_0 = arith.constant 0 : i32
    %c0_i32_1 = arith.constant 0 : i32
    return %c0_i32, %c0_i32_0 : i32, i32
  }
  func.func @transform_18(%arg0: i32) -> (i32, i32) {
    %c0_i32 = arith.constant 0 : i32
    %c0_i32_0 = arith.constant 0 : i32
    %c0_i32_1 = arith.constant 0 : i32
    return %c0_i32, %c0_i32_0 : i32, i32
  }
  func.func @transform_19(%arg0: i32) -> (i32, i32) {
    %c0_i32 = arith.constant 0 : i32
    %c0_i32_0 = arith.constant 0 : i32
    %c0_i32_1 = arith.constant 0 : i32
    return %c0_i32, %c0_i32_0 : i32, i32
  }
}

</mosaic_0001>

<bundles_post_ra>
// kernel: simsiam_forward.1
= control target key start
LH: loop header
LB: loop body
LE: loop exit
PB: predicated region body
PF: predicated region fallthrough
CT: control target
= control target key end

     0   :  { %vm202_vm0 = vcmask 293888   ;;  %vm587_vm1 = vcmask 1043456   ;;  %vm3888_vm2 = vmmov 0   ;;  %vm1728_vm3 = vcmask 523264   ;;  %s5037_s1 = inlined_call_operand.vmem [shape: f32[36,64], index: 1, kind: input, shape index: {}]   ;;  %s5038_s0 = inlined_call_operand.vmem [shape: f32[1024,36], index: 0, kind: input, shape index: {}]   ;;  %s5039_s3 = inlined_call_operand.vmem [shape: f32[4,1024], index: 3, kind: input, shape index: {}]   ;;  %s5040_s2 = inlined_call_operand.vmem [shape: f32[1,64], index: 2, kind: input, shape index: {}]   ;;  %s5041_s5 = inlined_call_operand.vmem [shape: f32[64,64], index: 5, kind: input, shape index: {}]   ;;  %s5042_s4 = inlined_call_operand.vmem [shape: f32[4,4], index: 4, kind: input, shape index: {}]   ;;  %s5043_s8 = inlined_call_operand.vmem [shape: f32[64,64], index: 8, kind: input, shape index: {}]   ;;  %s5044_s6 = inlined_call_operand.vmem [shape: f32[1,64], index: 6, kind: input, shape index: {}]   ;;  %s5045_s7 = inlined_call_operand.vmem [shape: f32[1,64], index: 7, kind: input, shape index: {}]   ;;  %s5046_s11 = inlined_call_operand.vmem [shape: f32[64,128], index: 11, kind: input, shape index: {}]   ;;  %s5047_s9 = inlined_call_operand.vmem [shape: f32[1,64], index: 9, kind: input, shape index: {}]   ;;  %s5048_s10 = inlined_call_operand.vmem [shape: f32[1,64], index: 10, kind: input, shape index: {}]   ;;  %s5049_s12 = inlined_call_operand.vmem [shape: f32[1,128], index: 12, kind: input, shape index: {}]   ;;  %s5050_s13 = inlined_call_operand.vmem [shape: f32[128,64], index: 13, kind: input, shape index: {}]   ;;  %s5051_s18 = inlined_call_operand.vmem [shape: f32[4,128], index: 18, kind: output, shape index: {0}]   ;;  %s5052_s16 = inlined_call_operand.vmem [shape: f32[64,128], index: 16, kind: input, shape index: {}]   ;;  %s5053_s14 = inlined_call_operand.vmem [shape: f32[1,64], index: 14, kind: input, shape index: {}]   ;;  %s5054_s15 = inlined_call_operand.vmem [shape: f32[1,64], index: 15, kind: input, shape index: {}]   ;;  %s5055_s17 = inlined_call_operand.vmem [shape: f32[1,128], index: 17, kind: input, shape index: {}]   ;;  %s5056_s19 = inlined_call_operand.vmem [shape: f32[4,128], index: 19, kind: output, shape index: {1}]  }
   0x1   :  { %5061 = sst [smem:[#allocation2_spill]] %s5037_s1  ;;  %vm1804_vm4 = vcmask 31744  }
   0x2   :  { %5062 = sst [smem:[#allocation3_spill]] %s5038_s0  ;;  %s5065_s20 = sld [smem:[#allocation2_spill]] }
   0x3   :  { %5063 = sst [smem:[#allocation4_spill]] %s5039_s3  ;;  %s5066_s26 = sld [smem:[#allocation3_spill]] }
   0x4   :  { %5064 = sst [smem:[#allocation5_spill]] %s5040_s2  ;;  %s5067_s23 = sld [smem:[#allocation4_spill]] }
   0x5   :  { %s5068_s24 = sld [smem:[#allocation5_spill]] }
   0x8   :  { %v190_v0 = vld [vmem:[%s5065_s20] sm:$0xff]  ;;  %v191_v1 = vld [vmem:[%s5065_s20 + $0x8] sm:$0xff]  ;;  %v192_v2 = vld [vmem:[%s5065_s20 + $0x10] sm:$0xff] }
   0x9   :  { %v3663_v3 = vpack.c.bf16 %v191_v1, %v190_v0  ;;  %v193_v4 = vld [vmem:[%s5065_s20 + $0x18] sm:$0xff]  ;;  %v62_v5 = vld [vmem:[%s5066_s26] sm:$0xff]  ;;  %v63_v8 = vld [vmem:[%s5066_s26 + $0x8] sm:$0xff] }
   0xa   :  { %v3667_v6 = vpack.c.bf16 %v193_v4, %v192_v2  ;;  %3320 = vmatprep.mubr.msk.f32.mxu0 %vm202_vm0, %v62_v5  ;;  %v194_v7 = vld [vmem:[%s5065_s20 + $0x20] sm:$0xf]  ;;  %v64_v9 = vld [vmem:[%s5066_s26 + $0x10] sm:$0xff]  ;;  %v65_v10 = vld [vmem:[%s5066_s26 + $0x18] sm:$0xff] }
   0xb   :  { %3664 = vmatprep.subr.bf16.mxu0 %v3663_v3  ;;  %v66_v11 = vld [vmem:[%s5066_s26 + $0x20] sm:$0xff]  ;;  %v67_v12 = vld [vmem:[%s5066_s26 + $0x28] sm:$0xff]  ;;  %v68_v13 = vld [vmem:[%s5066_s26 + $0x30] sm:$0xff] }
   0xc   :  { %3666 = vmatpush3.bf16.msra.mxu0 %v3663_v3  ;;  %v69_v14 = vld [vmem:[%s5066_s26 + $0x38] sm:$0xff]  ;;  %v70_v15 = vld [vmem:[%s5066_s26 + $0x40] sm:$0xff]  ;;  %v71_v16 = vld [vmem:[%s5066_s26 + $0x48] sm:$0xff] }
   0xd   :  { %3668 = vmatprep.subr.bf16.mxu0 %v3667_v6  ;;  %v72_v17 = vld [vmem:[%s5066_s26 + $0x50] sm:$0xff]  ;;  %v73_v18 = vld [vmem:[%s5066_s26 + $0x58] sm:$0xff]  ;;  %v74_v19 = vld [vmem:[%s5066_s26 + $0x60] sm:$0xff] }
   0xe   :  { %v75_v20 = vld [vmem:[%s5066_s26 + $0x68] sm:$0xff]  ;;  %v76_v21 = vld [vmem:[%s5066_s26 + $0x70] sm:$0xff]  ;;  %v77_v22 = vld [vmem:[%s5066_s26 + $0x78] sm:$0xff] }
   0xf   :  { %v78_v23 = vld [vmem:[%s5066_s26 + $0x80] sm:$0xff]  ;;  %v79_v24 = vld [vmem:[%s5066_s26 + $0x88] sm:$0xff]  ;;  %v80_v25 = vld [vmem:[%s5066_s26 + $0x90] sm:$0xff] }
  0x10   :  { %3670 = vmatpush3.bf16.msra.mxu0 %v3667_v6  ;;  %v81_v26 = vld [vmem:[%s5066_s26 + $0x98] sm:$0xff]  ;;  %v82_v27 = vld [vmem:[%s5066_s26 + $0xa0] sm:$0xff]  ;;  %v83_v28 = vld [vmem:[%s5066_s26 + $0xa8] sm:$0xff] }
  0x11   :  { %3318 = vmatprep.subr.msk.mxu0 %vm587_vm1, %v194_v7  ;;  %v84_v29 = vld [vmem:[%s5066_s26 + $0xb0] sm:$0xff]  ;;  %v85_v30 = vld [vmem:[%s5066_s26 + $0xb8] sm:$0xff]  ;;  %v86_v31 = vld [vmem:[%s5066_s26 + $0xc0] sm:$0xff] }
  0x12   :  { %v87_v32 = vld [vmem:[%s5066_s26 + $0xc8] sm:$0xff]  ;;  %v88_v33 = vld [vmem:[%s5066_s26 + $0xd0] sm:$0xff]  ;;  %v89_v34 = vld [vmem:[%s5066_s26 + $0xd8] sm:$0xff] }
  0x13   :  { %v90_v35 = vld [vmem:[%s5066_s26 + $0xe0] sm:$0xff]  ;;  %v91_v36 = vld [vmem:[%s5066_s26 + $0xe8] sm:$0xff]  ;;  %v92_v37 = vld [vmem:[%s5066_s26 + $0xf0] sm:$0xff] }
  0x14   :  { %3319 = vmatpush3.msk.msra.mxu0 %vm587_vm1, %v194_v7  ;;  %v93_v38 = vld [vmem:[%s5066_s26 + $0xf8] sm:$0xff]  ;;  %v94_v39 = vld [vmem:[%s5066_s26 + $0x100] sm:$0xff]  ;;  %v95_v40 = vld [vmem:[%s5066_s26 + $0x108] sm:$0xff] }
  0x15   :  { %3321 = vmatmul.mubr.msk.f32.vlgmr.msra.gmra.mrb[0].mxu0 %vm202_vm0, %v63_v8  ;;  %v96_v41 = vld [vmem:[%s5066_s26 + $0x110] sm:$0xff]  ;;  %v97_v42 = vld [vmem:[%s5066_s26 + $0x118] sm:$0xff]  ;;  %v98_v43 = vld [vmem:[%s5066_s26 + $0x120] sm:$0xff] }
  0x16   :  { %3323 = vmatprep.mubr.msk.f32.mxu0 %vm202_vm0, %v64_v9  ;;  %v99_v44 = vld [vmem:[%s5066_s26 + $0x128] sm:$0xff]  ;;  %v100_v45 = vld [vmem:[%s5066_s26 + $0x130] sm:$0xff]  ;;  %v101_v46 = vld [vmem:[%s5066_s26 + $0x138] sm:$0xff] }
  0x17   :  { %v102_v47 = vld [vmem:[%s5066_s26 + $0x140] sm:$0xff]  ;;  %v103_v48 = vld [vmem:[%s5066_s26 + $0x148] sm:$0xff]  ;;  %v104_v49 = vld [vmem:[%s5066_s26 + $0x150] sm:$0xff] }
  0x18   :  { %v105_v50 = vld [vmem:[%s5066_s26 + $0x158] sm:$0xff]  ;;  %v106_v51 = vld [vmem:[%s5066_s26 + $0x160] sm:$0xff]  ;;  %v107_v52 = vld [vmem:[%s5066_s26 + $0x168] sm:$0xff] }
  0x19   :  { %3324 = vmatmul.mubr.msk.f32.gmra.mrb[2].mxu0 %vm202_vm0, %v65_v10  ;;  %v108_v53 = vld [vmem:[%s5066_s26 + $0x170] sm:$0xff]  ;;  %v109_v54 = vld [vmem:[%s5066_s26 + $0x178] sm:$0xff]  ;;  %v110_v55 = vld [vmem:[%s5066_s26 + $0x180] sm:$0xff] }
  0x1a   :  { %3326 = vmatprep.mubr.msk.f32.mxu0 %vm202_vm0, %v66_v11  ;;  %v111_v56 = vld [vmem:[%s5066_s26 + $0x188] sm:$0xff]  ;;  %v112_v57 = vld [vmem:[%s5066_s26 + $0x190] sm:$0xff]  ;;  %v113_v58 = vld [vmem:[%s5066_s26 + $0x198] sm:$0xff] }
  0x1b   :  { %v114_v59 = vld [vmem:[%s5066_s26 + $0x1a0] sm:$0xff]  ;;  %v115_v60 = vld [vmem:[%s5066_s26 + $0x1a8] sm:$0xff]  ;;  %v116_v61 = vld [vmem:[%s5066_s26 + $0x1b0] sm:$0xff] }
  0x1c   :  { %v117_v62 = vld [vmem:[%s5066_s26 + $0x1b8] sm:$0xff]  ;;  %v118_v63 = vld [vmem:[%s5066_s26 + $0x1c0] sm:$0xff]  ;;  %v119_v0 = vld [vmem:[%s5066_s26 + $0x1c8] sm:$0xff] }
  0x1d   :  { %3327 = vmatmul.mubr.msk.f32.gmra.mrb[4].mxu0 %vm202_vm0, %v67_v12  ;;  %v120_v1 = vld [vmem:[%s5066_s26 + $0x1d0] sm:$0xff]  ;;  %v121_v2 = vld [vmem:[%s5066_s26 + $0x1d8] sm:$0xff]  ;;  %v122_v3 = vld [vmem:[%s5066_s26 + $0x1e0] sm:$0xff] }
  0x1e   :  { %3329 = vmatprep.mubr.msk.f32.mxu0 %vm202_vm0, %v68_v13  ;;  %v123_v4 = vld [vmem:[%s5066_s26 + $0x1e8] sm:$0xff]  ;;  %v124_v5 = vld [vmem:[%s5066_s26 + $0x1f0] sm:$0xff]  ;;  %v125_v6 = vld [vmem:[%s5066_s26 + $0x1f8] sm:$0xff] }
  0x1f   :  { %v126_v7 = vld [vmem:[%s5066_s26 + $0x200] sm:$0xff]  ;;  %v127_v8 = vld [vmem:[%s5066_s26 + $0x208] sm:$0xff]  ;;  %v128_v9 = vld [vmem:[%s5066_s26 + $0x210] sm:$0xff] }
  0x20   :  { %v129_v10 = vld [vmem:[%s5066_s26 + $0x218] sm:$0xff]  ;;  %v130_v11 = vld [vmem:[%s5066_s26 + $0x220] sm:$0xff]  ;;  %v131_v12 = vld [vmem:[%s5066_s26 + $0x228] sm:$0xff] }
  0x21   :  { %3330 = vmatmul.mubr.msk.f32.gmra.mrb[6].mxu0 %vm202_vm0, %v69_v14  ;;  %v132_v13 = vld [vmem:[%s5066_s26 + $0x230] sm:$0xff]  ;;  %v133_v14 = vld [vmem:[%s5066_s26 + $0x238] sm:$0xff] }
  0x22   :  { %3332 = vmatprep.mubr.msk.f32.mxu0 %vm202_vm0, %v70_v15  ;;  %v134_v15 = vld [vmem:[%s5066_s26 + $0x240] sm:$0xff] }
  0x25   :  { %3333 = vmatmul.mubr.msk.f32.gmra.mrb[8].mxu0 %vm202_vm0, %v71_v16  ;;  %v135_v16 = vld [vmem:[%s5066_s26 + $0x248] sm:$0xff] }
  0x26   :  { %3335 = vmatprep.mubr.msk.f32.mxu0 %vm202_vm0, %v72_v17  ;;  %v136_v17 = vld [vmem:[%s5066_s26 + $0x250] sm:$0xff] }
  0x29   :  { %3336 = vmatmul.mubr.msk.f32.gmra.mrb[10].mxu0 %vm202_vm0, %v73_v18  ;;  %v137_v18 = vld [vmem:[%s5066_s26 + $0x258] sm:$0xff] }
  0x2a   :  { %3338 = vmatprep.mubr.msk.f32.mxu0 %vm202_vm0, %v74_v19  ;;  %v138_v19 = vld [vmem:[%s5066_s26 + $0x260] sm:$0xff] }
  0x2d   :  { %3339 = vmatmul.mubr.msk.f32.gmra.mrb[12].mxu0 %vm202_vm0, %v75_v20  ;;  %v139_v20 = vld [vmem:[%s5066_s26 + $0x268] sm:$0xff] }
  0x2e   :  { %3341 = vmatprep.mubr.msk.f32.mxu0 %vm202_vm0, %v76_v21  ;;  %v140_v21 = vld [vmem:[%s5066_s26 + $0x270] sm:$0xff] }
  0x31   :  { %3342 = vmatmul.mubr.msk.f32.gmra.mrb[14].mxu0 %vm202_vm0, %v77_v22  ;;  %v141_v22 = vld [vmem:[%s5066_s26 + $0x278] sm:$0xff] }
  0x32   :  { %3344 = vmatprep.mubr.msk.f32.mxu0 %vm202_vm0, %v78_v23  ;;  %v142_v23 = vld [vmem:[%s5066_s26 + $0x280] sm:$0xff] }
  0x35   :  { %3345 = vmatmul.mubr.msk.f32.gmra.mrb[16].mxu0 %vm202_vm0, %v79_v24  ;;  %v143_v24 = vld [vmem:[%s5066_s26 + $0x288] sm:$0xff] }
  0x36   :  { %3347 = vmatprep.mubr.msk.f32.mxu0 %vm202_vm0, %v80_v25  ;;  %v144_v25 = vld [vmem:[%s5066_s26 + $0x290] sm:$0xff] }
  0x39   :  { %3348 = vmatmul.mubr.msk.f32.gmra.mrb[18].mxu0 %vm202_vm0, %v81_v26  ;;  %v145_v26 = vld [vmem:[%s5066_s26 + $0x298] sm:$0xff] }
  0x3a   :  { %3350 = vmatprep.mubr.msk.f32.mxu0 %vm202_vm0, %v82_v27  ;;  %v146_v27 = vld [vmem:[%s5066_s26 + $0x2a0] sm:$0xff] }
  0x3d   :  { %3351 = vmatmul.mubr.msk.f32.gmra.mrb[20].mxu0 %vm202_vm0, %v83_v28  ;;  %v147_v28 = vld [vmem:[%s5066_s26 + $0x2a8] sm:$0xff] }
  0x3e   :  { %3353 = vmatprep.mubr.msk.f32.mxu0 %vm202_vm0, %v84_v29  ;;  %v148_v29 = vld [vmem:[%s5066_s26 + $0x2b0] sm:$0xff] }
  0x41   :  { %3354 = vmatmul.mubr.msk.f32.gmra.mrb[22].mxu0 %vm202_vm0, %v85_v30  ;;  %v149_v30 = vld [vmem:[%s5066_s26 + $0x2b8] sm:$0xff] }
  0x42   :  { %3356 = vmatprep.mubr.msk.f32.mxu0 %vm202_vm0, %v86_v31  ;;  %v150_v31 = vld [vmem:[%s5066_s26 + $0x2c0] sm:$0xff] }
  0x45   :  { %3357 = vmatmul.mubr.msk.f32.gmra.mrb[24].mxu0 %vm202_vm0, %v87_v32  ;;  %v151_v32 = vld [vmem:[%s5066_s26 + $0x2c8] sm:$0xff] }
  0x46   :  { %3359 = vmatprep.mubr.msk.f32.mxu0 %vm202_vm0, %v88_v33  ;;  %v152_v33 = vld [vmem:[%s5066_s26 + $0x2d0] sm:$0xff] }
  0x49   :  { %3360 = vmatmul.mubr.msk.f32.gmra.mrb[26].mxu0 %vm202_vm0, %v89_v34  ;;  %v153_v34 = vld [vmem:[%s5066_s26 + $0x2d8] sm:$0xff] }
  0x4a   :  { %3362 = vmatprep.mubr.msk.f32.mxu0 %vm202_vm0, %v90_v35  ;;  %v154_v35 = vld [vmem:[%s5066_s26 + $0x2e0] sm:$0xff] }
  0x4d   :  { %3363 = vmatmul.mubr.msk.f32.gmra.mrb[28].mxu0 %vm202_vm0, %v91_v36  ;;  %v155_v36 = vld [vmem:[%s5066_s26 + $0x2e8] sm:$0xff] }
  0x4e   :  { %3365 = vmatprep.mubr.msk.f32.mxu0 %vm202_vm0, %v92_v37  ;;  %v156_v37 = vld [vmem:[%s5066_s26 + $0x2f0] sm:$0xff] }
  0x51   :  { %3366 = vmatmul.mubr.msk.f32.gmra.mrb[30].mxu0 %vm202_vm0, %v93_v38  ;;  %v4389_v38 = vld [vmem:[%s5067_s23] sm:$0xff] }
  0x52   :  { %3368 = vmatprep.mubr.msk.f32.mxu0 %vm202_vm0, %v94_v39  ;;  %v157_v39 = vld [vmem:[%s5066_s26 + $0x2f8] sm:$0xff] }
  0x55   :  { %3369 = vmatmul.mubr.msk.f32.gmra.mrb[32].mxu0 %vm202_vm0, %v95_v40  ;;  %v1432_v40 = vcombine.high %v4389_v38, %v4389_v38 }
  0x56   :  { %3371 = vmatprep.mubr.msk.f32.mxu0 %vm202_vm0, %v96_v41  ;;  %v158_v41 = vld [vmem:[%s5066_s26 + $0x300] sm:$0xff] }
  0x57   :  { %1504 = vmatprep.mubr.f32.mxu1 %v1432_v40 }
  0x59   :  { %3372 = vmatmul.mubr.msk.f32.gmra.mrb[34].mxu0 %vm202_vm0, %v97_v42  ;;  %v159_v42 = vld [vmem:[%s5066_s26 + $0x308] sm:$0xff] }
  0x5a   :  { %3374 = vmatprep.mubr.msk.f32.mxu0 %vm202_vm0, %v98_v43  ;;  %v160_v43 = vld [vmem:[%s5066_s26 + $0x310] sm:$0xff] }
  0x5d   :  { %3375 = vmatmul.mubr.msk.f32.gmra.mrb[36].mxu0 %vm202_vm0, %v99_v44  ;;  %v161_v44 = vld [vmem:[%s5066_s26 + $0x318] sm:$0xff] }
  0x5e   :  { %3377 = vmatprep.mubr.msk.f32.mxu0 %vm202_vm0, %v100_v45  ;;  %v162_v45 = vld [vmem:[%s5066_s26 + $0x320] sm:$0xff] }
  0x61   :  { %3378 = vmatmul.mubr.msk.f32.gmra.mrb[38].mxu0 %vm202_vm0, %v101_v46  ;;  %v163_v46 = vld [vmem:[%s5066_s26 + $0x328] sm:$0xff] }
  0x62   :  { %3380 = vmatprep.mubr.msk.f32.mxu0 %vm202_vm0, %v102_v47  ;;  %v164_v47 = vld [vmem:[%s5066_s26 + $0x330] sm:$0xff] }
  0x65   :  { %3381 = vmatmul.mubr.msk.f32.gmra.mrb[40].mxu0 %vm202_vm0, %v103_v48  ;;  %v165_v48 = vld [vmem:[%s5066_s26 + $0x338] sm:$0xff] }
  0x66   :  { %3383 = vmatprep.mubr.msk.f32.mxu0 %vm202_vm0, %v104_v49  ;;  %v166_v49 = vld [vmem:[%s5066_s26 + $0x340] sm:$0xff] }
  0x69   :  { %3384 = vmatmul.mubr.msk.f32.gmra.mrb[42].mxu0 %vm202_vm0, %v105_v50  ;;  %v167_v50 = vld [vmem:[%s5066_s26 + $0x348] sm:$0xff] }
  0x6a   :  { %3386 = vmatprep.mubr.msk.f32.mxu0 %vm202_vm0, %v106_v51  ;;  %v168_v51 = vld [vmem:[%s5066_s26 + $0x350] sm:$0xff] }
  0x6d   :  { %3387 = vmatmul.mubr.msk.f32.gmra.mrb[44].mxu0 %vm202_vm0, %v107_v52  ;;  %v4444_v52 = vld [vmem:[%s5068_s24] ss:$0 sm:$0xff] }
  0x6e   :  { %3389 = vmatprep.mubr.msk.f32.mxu0 %vm202_vm0, %v108_v53  ;;  %v169_v53 = vld [vmem:[%s5066_s26 + $0x358] sm:$0xff] }
  0x71   :  { %3390 = vmatmul.mubr.msk.f32.gmra.mrb[46].mxu0 %vm202_vm0, %v109_v54  ;;  %v170_v54 = vld [vmem:[%s5066_s26 + $0x360] sm:$0xff] }
  0x72   :  { %3392 = vmatprep.mubr.msk.f32.mxu0 %vm202_vm0, %v110_v55 }
  0x75   :  { %3393 = vmatmul.mubr.msk.f32.gmra.mrb[48].mxu0 %vm202_vm0, %v111_v56 }
  0x76   :  { %3395 = vmatprep.mubr.msk.f32.mxu0 %vm202_vm0, %v112_v57 }
  0x79   :  { %3396 = vmatmul.mubr.msk.f32.gmra.mrb[50].mxu0 %vm202_vm0, %v113_v58 }
  0x7a   :  { %3398 = vmatprep.mubr.msk.f32.mxu0 %vm202_vm0, %v114_v59  ;;  %v171_v59 = vld [vmem:[%s5066_s26 + $0x368] sm:$0xff] }
  0x7d   :  { %3399 = vmatmul.mubr.msk.f32.gmra.mrb[52].mxu0 %vm202_vm0, %v115_v60 }
  0x7e   :  { %3401 = vmatprep.mubr.msk.f32.mxu0 %vm202_vm0, %v116_v61  ;;  %v172_v61 = vld [vmem:[%s5066_s26 + $0x370] sm:$0xff] }
  0x81   :  { %3402 = vmatmul.mubr.msk.f32.gmra.mrb[54].mxu0 %vm202_vm0, %v117_v62 }
  0x82   :  { %3404 = vmatprep.mubr.msk.f32.mxu0 %vm202_vm0, %v118_v63 }
  0x85   :  { %3405 = vmatmul.mubr.msk.f32.gmra.mrb[56].mxu0 %vm202_vm0, %v119_v0 }
  0x86   :  { %3407 = vmatprep.mubr.msk.f32.mxu0 %vm202_vm0, %v120_v1 }
  0x89   :  { %3408 = vmatmul.mubr.msk.f32.gmra.mrb[58].mxu0 %vm202_vm0, %v121_v2 }
  0x8a   :  { %3410 = vmatprep.mubr.msk.f32.mxu0 %vm202_vm0, %v122_v3  ;;  %v173_v3 = vld [vmem:[%s5066_s26 + $0x378] sm:$0xff] }
  0x8d   :  { %3411 = vmatmul.mubr.msk.f32.gmra.mrb[60].mxu0 %vm202_vm0, %v123_v4 }
  0x8e   :  { %3413 = vmatprep.mubr.msk.f32.mxu0 %vm202_vm0, %v124_v5 }
  0x91   :  { %3414 = vmatmul.mubr.msk.f32.gmra.mrb[62].mxu0 %vm202_vm0, %v125_v6  ;;  %v174_v6 = vld [vmem:[%s5066_s26 + $0x380] sm:$0xff] }
  0x92   :  { %3416 = vmatprep.mubr.msk.f32.mxu0 %vm202_vm0, %v126_v7 }
  0x95   :  { %3417 = vmatmul.mubr.msk.f32.gmra.mrb[64].mxu0 %vm202_vm0, %v127_v8 }
  0x96   :  { %3419 = vmatprep.mubr.msk.f32.mxu0 %vm202_vm0, %v128_v9 }
  0x99   :  { %3420 = vmatmul.mubr.msk.f32.gmra.mrb[66].mxu0 %vm202_vm0, %v129_v10 }
  0x9a   :  { %3422 = vmatprep.mubr.msk.f32.mxu0 %vm202_vm0, %v130_v11 }
  0x9d   :  { %3423 = vmatmul.mubr.msk.f32.gmra.mrb[68].mxu0 %vm202_vm0, %v131_v12 }
  0x9e   :  { %3425 = vmatprep.mubr.msk.f32.mxu0 %vm202_vm0, %v132_v13  ;;  %v175_v13 = vld [vmem:[%s5066_s26 + $0x388] sm:$0xff] }
  0xa1   :  { %3426 = vmatmul.mubr.msk.f32.gmra.mrb[70].mxu0 %vm202_vm0, %v133_v14 }
  0xa2   :  { %3428 = vmatprep.mubr.msk.f32.mxu0 %vm202_vm0, %v134_v15  ;;  %v176_v15 = vld [vmem:[%s5066_s26 + $0x390] sm:$0xff] }
  0xa5   :  { %3429 = vmatmul.mubr.msk.f32.gmra.mrb[72].mxu0 %vm202_vm0, %v135_v16 }
  0xa6   :  { %3431 = vmatprep.mubr.msk.f32.mxu0 %vm202_vm0, %v136_v17 }
  0xa9   :  { %3432 = vmatmul.mubr.msk.f32.gmra.mrb[74].mxu0 %vm202_vm0, %v137_v18 }
  0xaa   :  { %3434 = vmatprep.mubr.msk.f32.mxu0 %vm202_vm0, %v138_v19 }
  0xad   :  { %3435 = vmatmul.mubr.msk.f32.gmra.mrb[76].mxu0 %vm202_vm0, %v139_v20 }
  0xae   :  { %3437 = vmatprep.mubr.msk.f32.mxu0 %vm202_vm0, %v140_v21 }
  0xb1   :  { %3438 = vmatmul.mubr.msk.f32.gmra.mrb[78].mxu0 %vm202_vm0, %v141_v22  ;;  %v177_v22 = vld [vmem:[%s5066_s26 + $0x398] sm:$0xff] }
  0xb2   :  { %3440 = vmatprep.mubr.msk.f32.mxu0 %vm202_vm0, %v142_v23 }
  0xb5   :  { %3441 = vmatmul.mubr.msk.f32.gmra.mrb[80].mxu0 %vm202_vm0, %v143_v24  ;;  %v178_v24 = vld [vmem:[%s5066_s26 + $0x3a0] sm:$0xff] }
  0xb6   :  { %3443 = vmatprep.mubr.msk.f32.mxu0 %vm202_vm0, %v144_v25 }
  0xb9   :  { %3444 = vmatmul.mubr.msk.f32.gmra.mrb[82].mxu0 %vm202_vm0, %v145_v26 }
  0xba   :  { %3446 = vmatprep.mubr.msk.f32.mxu0 %vm202_vm0, %v146_v27 }
  0xbd   :  { %3447 = vmatmul.mubr.msk.f32.gmra.mrb[84].mxu0 %vm202_vm0, %v147_v28 }
  0xbe   :  { %3449 = vmatprep.mubr.msk.f32.mxu0 %vm202_vm0, %v148_v29 }
  0xc1   :  { %3450 = vmatmul.mubr.msk.f32.gmra.mrb[86].mxu0 %vm202_vm0, %v149_v30 }
  0xc2   :  { %3452 = vmatprep.mubr.msk.f32.mxu0 %vm202_vm0, %v150_v31  ;;  %v179_v31 = vld [vmem:[%s5066_s26 + $0x3a8] sm:$0xff] }
  0xc5   :  { %3453 = vmatmul.mubr.msk.f32.gmra.mrb[88].mxu0 %vm202_vm0, %v151_v32 }
  0xc6   :  { %3455 = vmatprep.mubr.msk.f32.mxu0 %vm202_vm0, %v152_v33  ;;  %v180_v33 = vld [vmem:[%s5066_s26 + $0x3b0] sm:$0xff] }
  0xc9   :  { %3456 = vmatmul.mubr.msk.f32.gmra.mrb[90].mxu0 %vm202_vm0, %v153_v34 }
  0xca   :  { %3458 = vmatprep.mubr.msk.f32.mxu0 %vm202_vm0, %v154_v35 }
  0xcd   :  { %3459 = vmatmul.mubr.msk.f32.gmra.mrb[92].mxu0 %vm202_vm0, %v155_v36 }
  0xce   :  { %3461 = vmatprep.mubr.msk.f32.mxu0 %vm202_vm0, %v156_v37 }
  0xd1   :  { %3462 = vmatmul.mubr.msk.f32.gmra.mrb[94].mxu0 %vm202_vm0, %v157_v39 }
  0xd2   :  { %3464 = vmatprep.mubr.msk.f32.mxu0 %vm202_vm0, %v158_v41  ;;  %v181_v41 = vld [vmem:[%s5066_s26 + $0x3b8] sm:$0xff] }
  0xd5   :  { %3465 = vmatmul.mubr.msk.f32.gmra.mrb[96].mxu0 %vm202_vm0, %v159_v42 }
  0xd6   :  { %3467 = vmatprep.mubr.msk.f32.mxu0 %vm202_vm0, %v160_v43  ;;  %v182_v43 = vld [vmem:[%s5066_s26 + $0x3c0] sm:$0xff] }
  0xd9   :  { %3468 = vmatmul.mubr.msk.f32.gmra.mrb[98].mxu0 %vm202_vm0, %v161_v44 }
  0xda   :  { %3470 = vmatprep.mubr.msk.f32.mxu0 %vm202_vm0, %v162_v45 }
  0xdd   :  { %3471 = vmatmul.mubr.msk.f32.gmra.mrb[100].mxu0 %vm202_vm0, %v163_v46 }
  0xde   :  { %3473 = vmatprep.mubr.msk.f32.mxu0 %vm202_vm0, %v164_v47 }
  0xe1   :  { %3474 = vmatmul.mubr.msk.f32.gmra.mrb[102].mxu0 %vm202_vm0, %v165_v48 }
  0xe2   :  { %3476 = vmatprep.mubr.msk.f32.mxu0 %vm202_vm0, %v166_v49 }
  0xe5   :  { %3477 = vmatmul.mubr.msk.f32.gmra.mrb[104].mxu0 %vm202_vm0, %v167_v50  ;;  %v183_v50 = vld [vmem:[%s5066_s26 + $0x3c8] sm:$0xff] }
  0xe6   :  { %3479 = vmatprep.mubr.msk.f32.mxu0 %vm202_vm0, %v168_v51 }
  0xe8   :  { %v3322_v55 = vpop.f32.mrb[0].mxu0 }
  0xe9   :  { %v663_v56 = vadd.f32 %v3322_v55, %v4444_v52  ;;  %v657_v57 = vpop.f32.mrb[1].mxu0  ;;  %3480 = vmatmul.mubr.msk.f32.gmra.mrb[106].mxu0 %vm202_vm0, %v169_v53  ;;  %v184_v53 = vld [vmem:[%s5066_s26 + $0x3d0] sm:$0xff] }
  0xea   :  { %v658_v58 = vadd.f32 %v4444_v52, %v657_v57  ;;  %3482 = vmatprep.mubr.msk.f32.mxu0 %vm202_vm0, %v170_v54 }
  0xeb   :  { %v1297_v60 = vmax.f32 %v663_v56, 0.0 }
  0xec   :  { %v1296_v62 = vmax.f32 %v658_v58, 0.0  ;;  %v3325_v63 = vpop.f32.mrb[2].mxu0 }
  0xed   :  { %v673_v0 = vadd.f32 %v3325_v63, %v4444_v52  ;;  %v667_v1 = vpop.f32.mrb[3].mxu0  ;;  %3483 = vmatmul.mubr.msk.f32.gmra.mrb[108].mxu0 %vm202_vm0, %v171_v59 }
  0xee   :  { %v668_v2 = vadd.f32 %v4444_v52, %v667_v1  ;;  %3485 = vmatprep.mubr.msk.f32.mxu0 %vm202_vm0, %v172_v61  ;;  %v4470_v4 = vpack.c.bf16 %v1297_v60, %v1296_v62  ;;  %v185_v60 = vld [vmem:[%s5066_s26 + $0x3d8] sm:$0xff]  ;;  %v186_v62 = vld [vmem:[%s5066_s26 + $0x3e0] sm:$0xff] }
  0xef   :  { %v1299_v5 = vmax.f32 %v673_v0, 0.0 }
  0xf0   :  { %v1298_v7 = vmax.f32 %v668_v2, 0.0  ;;  %v3328_v8 = vpop.f32.mrb[4].mxu0 }
  0xf1   :  { %v683_v9 = vadd.f32 %v3328_v8, %v4444_v52  ;;  %v677_v10 = vpop.f32.mrb[5].mxu0  ;;  %3486 = vmatmul.mubr.msk.f32.gmra.mrb[110].mxu0 %vm202_vm0, %v173_v3  ;;  %v188_v8 = vld [vmem:[%s5066_s26 + $0x3f0] sm:$0xff] }
  0xf2   :  { %v4477_v11 = vpack.c.bf16 %v1299_v5, %v1298_v7  ;;  %v678_v12 = vadd.f32 %v4444_v52, %v677_v10  ;;  %3488 = vmatprep.mubr.msk.f32.mxu0 %vm202_vm0, %v174_v6  ;;  %v187_v6 = vld [vmem:[%s5066_s26 + $0x3e8] sm:$0xff] }
  0xf3   :  { %v1301_v14 = vmax.f32 %v683_v9, 0.0 }
  0xf4   :  { %v1300_v16 = vmax.f32 %v678_v12, 0.0  ;;  %v3331_v17 = vpop.f32.mrb[6].mxu0 }
  0xf5   :  { %v693_v18 = vadd.f32 %v3331_v17, %v4444_v52  ;;  %v687_v19 = vpop.f32.mrb[7].mxu0  ;;  %3489 = vmatmul.mubr.msk.f32.gmra.mrb[112].mxu0 %vm202_vm0, %v175_v13 }
  0xf6   :  { %v4489_v20 = vpack.c.bf16 %v1301_v14, %v1300_v16  ;;  %v688_v21 = vadd.f32 %v4444_v52, %v687_v19  ;;  %3491 = vmatprep.mubr.msk.f32.mxu0 %vm202_vm0, %v176_v15  ;;  %v189_v16 = vld [vmem:[%s5066_s26 + $0x3f8] sm:$0xff] }
  0xf7   :  { %v1303_v23 = vmax.f32 %v693_v18, 0.0 }
  0xf8   :  { %v1302_v25 = vmax.f32 %v688_v21, 0.0  ;;  %v3334_v26 = vpop.f32.mrb[8].mxu0 }
  0xf9   :  { %v703_v27 = vadd.f32 %v3334_v26, %v4444_v52  ;;  %v697_v28 = vpop.f32.mrb[9].mxu0  ;;  %3492 = vmatmul.mubr.msk.f32.gmra.mrb[114].mxu0 %vm202_vm0, %v177_v22 }
  0xfa   :  { %v4501_v29 = vpack.c.bf16 %v1303_v23, %v1302_v25  ;;  %v698_v30 = vadd.f32 %v4444_v52, %v697_v28  ;;  %3494 = vmatprep.mubr.msk.f32.mxu0 %vm202_vm0, %v178_v24 }
  0xfb   :  { %v1305_v32 = vmax.f32 %v703_v27, 0.0 }
  0xfc   :  { %v1304_v34 = vmax.f32 %v698_v30, 0.0  ;;  %v3337_v35 = vpop.f32.mrb[10].mxu0 }
  0xfd   :  { %v713_v36 = vadd.f32 %v3337_v35, %v4444_v52  ;;  %v707_v37 = vpop.f32.mrb[11].mxu0  ;;  %3495 = vmatmul.mubr.msk.f32.gmra.mrb[116].mxu0 %vm202_vm0, %v179_v31 }
  0xfe   :  { %v4513_v39 = vpack.c.bf16 %v1305_v32, %v1304_v34  ;;  %v708_v40 = vadd.f32 %v4444_v52, %v707_v37  ;;  %3497 = vmatprep.mubr.msk.f32.mxu0 %vm202_vm0, %v180_v33 }
  0xff   :  { %v1307_v42 = vmax.f32 %v713_v36, 0.0 }
 0x100   :  { %v1306_v44 = vmax.f32 %v708_v40, 0.0  ;;  %v3340_v45 = vpop.f32.mrb[12].mxu0 }
 0x101   :  { %v723_v46 = vadd.f32 %v3340_v45, %v4444_v52  ;;  %v717_v47 = vpop.f32.mrb[13].mxu0  ;;  %3498 = vmatmul.mubr.msk.f32.gmra.mrb[118].mxu0 %vm202_vm0, %v181_v41 }
 0x102   :  { %v4525_v48 = vpack.c.bf16 %v1307_v42, %v1306_v44  ;;  %v718_v49 = vadd.f32 %v4444_v52, %v717_v47  ;;  %3500 = vmatprep.mubr.msk.f32.mxu0 %vm202_vm0, %v182_v43 }
 0x103   :  { %v1309_v51 = vmax.f32 %v723_v46, 0.0 }
 0x104   :  { %v1308_v54 = vmax.f32 %v718_v49, 0.0  ;;  %v3343_v55 = vpop.f32.mrb[14].mxu0 }
 0x105   :  { %v733_v56 = vadd.f32 %v3343_v55, %v4444_v52  ;;  %v727_v57 = vpop.f32.mrb[15].mxu0  ;;  %3501 = vmatmul.mubr.msk.f32.gmra.mrb[120].mxu0 %vm202_vm0, %v183_v50 }
 0x106   :  { %v4537_v58 = vpack.c.bf16 %v1309_v51, %v1308_v54  ;;  %v728_v59 = vadd.f32 %v4444_v52, %v727_v57  ;;  %3503 = vmatprep.mubr.msk.f32.mxu0 %vm202_vm0, %v184_v53 }
 0x107   :  { %v1311_v61 = vmax.f32 %v733_v56, 0.0 }
 0x108   :  { %v1310_v63 = vmax.f32 %v728_v59, 0.0  ;;  %v3346_v0 = vpop.f32.mrb[16].mxu0 }
 0x109   :  { %v743_v1 = vadd.f32 %v3346_v0, %v4444_v52  ;;  %v737_v2 = vpop.f32.mrb[17].mxu0  ;;  %3504 = vmatmul.mubr.msk.f32.gmra.mrb[122].mxu0 %vm202_vm0, %v185_v60 }
 0x10a   :  { %v4549_v3 = vpack.c.bf16 %v1311_v61, %v1310_v63  ;;  %v738_v5 = vadd.f32 %v4444_v52, %v737_v2  ;;  %3506 = vmatprep.mubr.msk.f32.mxu0 %vm202_vm0, %v186_v62 }
 0x10b   :  { %v1313_v7 = vmax.f32 %v743_v1, 0.0 }
 0x10c   :  { %v1312_v9 = vmax.f32 %v738_v5, 0.0  ;;  %v3349_v10 = vpop.f32.mrb[18].mxu0 }
 0x10d   :  { %v753_v12 = vadd.f32 %v3349_v10, %v4444_v52  ;;  %v747_v13 = vpop.f32.mrb[19].mxu0  ;;  %3507 = vmatmul.mubr.msk.f32.gmra.mrb[124].mxu0 %vm202_vm0, %v187_v6  ;;  %v4591_v6 = vld [vmem:[%s5067_s23 + $0x8] sm:$0xff] }
 0x10e   :  { %v748_v14 = vadd.f32 %v4444_v52, %v747_v13  ;;  %3509 = vmatprep.mubr.msk.f32.mxu0 %vm202_vm0, %v188_v8  ;;  %v3671_v15 = vpack.c.bf16 %v1313_v7, %v1312_v9 }
 0x10f   :  { %v1315_v17 = vmax.f32 %v753_v12, 0.0 }
 0x110   :  { %v1314_v18 = vmax.f32 %v748_v14, 0.0  ;;  %v3352_v19 = vpop.f32.mrb[20].mxu0  ;;  %3672 = vmatprep.subr.bf16.mxu1 %v3671_v15 }
 0x111   :  { %v763_v21 = vadd.f32 %v3352_v19, %v4444_v52  ;;  %v757_v22 = vpop.f32.mrb[21].mxu0  ;;  %3510 = vmatmul.mubr.msk.f32.gmra.mrb[126].mxu0 %vm202_vm0, %v189_v16  ;;  %3674 = vmatpush3.bf16.msra.mxu1 %v4470_v4 }
 0x112   :  { %v3675_v23 = vpack.c.bf16 %v1315_v17, %v1314_v18  ;;  %v758_v24 = vadd.f32 %v4444_v52, %v757_v22 }
 0x113   :  { %v1317_v25 = vmax.f32 %v763_v21, 0.0 }
 0x114   :  { %v1316_v26 = vmax.f32 %v758_v24, 0.0  ;;  %v3355_v27 = vpop.f32.mrb[22].mxu0  ;;  %3676 = vmatprep.subr.bf16.mxu1 %v3675_v23 }
 0x115   :  { %v773_v28 = vadd.f32 %v3355_v27, %v4444_v52  ;;  %v767_v30 = vpop.f32.mrb[23].mxu0  ;;  %3678 = vmatpush3.bf16.msra.mxu1 %v4477_v11 }
 0x116   :  { %v3679_v31 = vpack.c.bf16 %v1317_v25, %v1316_v26  ;;  %v768_v32 = vadd.f32 %v4444_v52, %v767_v30 }
 0x117   :  { %v1319_v33 = vmax.f32 %v773_v28, 0.0 }
 0x118   :  { %v1318_v34 = vmax.f32 %v768_v32, 0.0  ;;  %v3358_v35 = vpop.f32.mrb[24].mxu0  ;;  %3680 = vmatprep.subr.bf16.mxu1 %v3679_v31 }
 0x119   :  { %v783_v4 = vadd.f32 %v3358_v35, %v4444_v52  ;;  %v777_v36 = vpop.f32.mrb[25].mxu0  ;;  %3682 = vmatpush3.bf16.msra.mxu1 %v4489_v20 }
 0x11a   :  { %v3683_v37 = vpack.c.bf16 %v1319_v33, %v1318_v34  ;;  %v778_v40 = vadd.f32 %v4444_v52, %v777_v36 }
 0x11b   :  { %v1321_v41 = vmax.f32 %v783_v4, 0.0 }
 0x11c   :  { %v1320_v42 = vmax.f32 %v778_v40, 0.0  ;;  %v3361_v43 = vpop.f32.mrb[26].mxu0  ;;  %3684 = vmatprep.subr.bf16.mxu1 %v3683_v37 }
 0x11d   :  { %v793_v11 = vadd.f32 %v3361_v43, %v4444_v52  ;;  %v787_v44 = vpop.f32.mrb[27].mxu0  ;;  %3686 = vmatpush3.bf16.msra.mxu1 %v4501_v29 }
 0x11e   :  { %v3687_v45 = vpack.c.bf16 %v1321_v41, %v1320_v42  ;;  %v788_v46 = vadd.f32 %v4444_v52, %v787_v44 }
 0x11f   :  { %v1323_v47 = vmax.f32 %v793_v11, 0.0 }
 0x120   :  { %v1322_v49 = vmax.f32 %v788_v46, 0.0  ;;  %v3364_v50 = vpop.f32.mrb[28].mxu0  ;;  %3688 = vmatprep.subr.bf16.mxu1 %v3687_v45 }
 0x121   :  { %v803_v20 = vadd.f32 %v3364_v50, %v4444_v52  ;;  %v797_v51 = vpop.f32.mrb[29].mxu0  ;;  %3690 = vmatpush3.bf16.msra.mxu1 %v4513_v39 }
 0x122   :  { %v3691_v53 = vpack.c.bf16 %v1323_v47, %v1322_v49  ;;  %v798_v54 = vadd.f32 %v4444_v52, %v797_v51 }
 0x123   :  { %v1325_v55 = vmax.f32 %v803_v20, 0.0 }
 0x124   :  { %v1324_v56 = vmax.f32 %v798_v54, 0.0  ;;  %v3367_v57 = vpop.f32.mrb[30].mxu0  ;;  %3692 = vmatprep.subr.bf16.mxu1 %v3691_v53 }
 0x125   :  { %v813_v29 = vadd.f32 %v3367_v57, %v4444_v52  ;;  %v807_v59 = vpop.f32.mrb[31].mxu0  ;;  %3694 = vmatpush3.bf16.msra.mxu1 %v4525_v48 }
 0x126   :  { %v3695_v60 = vpack.c.bf16 %v1325_v55, %v1324_v56  ;;  %v808_v61 = vadd.f32 %v4444_v52, %v807_v59 }
 0x127   :  { %v1327_v62 = vmax.f32 %v813_v29, 0.0 }
 0x128   :  { %v1326_v63 = vmax.f32 %v808_v61, 0.0  ;;  %v3370_v0 = vpop.f32.mrb[32].mxu0  ;;  %3696 = vmatprep.subr.bf16.mxu1 %v3695_v60 }
 0x129   :  { %v823_v39 = vadd.f32 %v3370_v0, %v4444_v52  ;;  %v817_v1 = vpop.f32.mrb[33].mxu0  ;;  %3698 = vmatpush3.bf16.msra.mxu1 %v4537_v58  ;;  %v1433_v58 = vcombine.high %v4591_v6, %v4591_v6 }
 0x12a   :  { %v3699_v2 = vpack.c.bf16 %v1327_v62, %v1326_v63  ;;  %v818_v5 = vadd.f32 %v4444_v52, %v817_v1 }
 0x12b   :  { %v1329_v48 = vmax.f32 %v823_v39, 0.0 }
 0x12c   :  { %v1328_v7 = vmax.f32 %v818_v5, 0.0  ;;  %v3373_v8 = vpop.f32.mrb[34].mxu0  ;;  %3700 = vmatprep.subr.bf16.mxu1 %v3699_v2 }
 0x12d   :  { %v833_v9 = vadd.f32 %v3373_v8, %v4444_v52  ;;  %v827_v10 = vpop.f32.mrb[35].mxu0  ;;  %3702 = vmatpush3.bf16.msra.mxu1 %v4549_v3 }
 0x12e   :  { %v4597_v12 = vpack.c.bf16 %v1329_v48, %v1328_v7  ;;  %v828_v13 = vadd.f32 %v4444_v52, %v827_v10 }
 0x12f   :  { %v1331_v14 = vmax.f32 %v833_v9, 0.0 }
 0x130   :  { %v1330_v15 = vmax.f32 %v828_v13, 0.0  ;;  %v3376_v16 = vpop.f32.mrb[36].mxu0  ;;  %1505 = vmatmul.mubr.f32.vlgmr.msra.gmra.mrb[0].mxu1 %v4389_v38 }
 0x131   :  { %v843_v17 = vadd.f32 %v3376_v16, %v4444_v52  ;;  %v837_v18 = vpop.f32.mrb[37].mxu0  ;;  %1574 = vmatprep.mubr.f32.mxu1 %v1433_v58 }
 0x132   :  { %v4602_v19 = vpack.c.bf16 %v1331_v14, %v1330_v15  ;;  %v838_v3 = vadd.f32 %v4444_v52, %v837_v18 }
 0x133   :  { %v1333_v21 = vmax.f32 %v843_v17, 0.0 }
 0x134   :  { %v1332_v22 = vmax.f32 %v838_v3, 0.0  ;;  %v3379_v23 = vpop.f32.mrb[38].mxu0 }
 0x135   :  { %v853_v24 = vadd.f32 %v3379_v23, %v4444_v52  ;;  %v847_v25 = vpop.f32.mrb[39].mxu0 }
 0x136   :  { %v4606_v26 = vpack.c.bf16 %v1333_v21, %v1332_v22  ;;  %v848_v27 = vadd.f32 %v4444_v52, %v847_v25 }
 0x137   :  { %v1335_v28 = vmax.f32 %v853_v24, 0.0 }
 0x138   :  { %v1334_v38 = vmax.f32 %v848_v27, 0.0  ;;  %v3382_v30 = vpop.f32.mrb[40].mxu0 }
 0x139   :  { %v863_v31 = vadd.f32 %v3382_v30, %v4444_v52  ;;  %v857_v32 = vpop.f32.mrb[41].mxu0 }
 0x13a   :  { %v4610_v33 = vpack.c.bf16 %v1335_v28, %v1334_v38  ;;  %v858_v34 = vadd.f32 %v4444_v52, %v857_v32 }
 0x13b   :  { %v1337_v35 = vmax.f32 %v863_v31, 0.0 }
 0x13c   :  { %v1336_v4 = vmax.f32 %v858_v34, 0.0  ;;  %v3385_v36 = vpop.f32.mrb[42].mxu0 }
 0x13d   :  { %v873_v37 = vadd.f32 %v3385_v36, %v4444_v52  ;;  %v867_v40 = vpop.f32.mrb[43].mxu0 }
 0x13e   :  { %v4614_v41 = vpack.c.bf16 %v1337_v35, %v1336_v4  ;;  %v868_v42 = vadd.f32 %v4444_v52, %v867_v40 }
 0x13f   :  { %v1339_v43 = vmax.f32 %v873_v37, 0.0 }
 0x140   :  { %v1338_v11 = vmax.f32 %v868_v42, 0.0  ;;  %v3388_v44 = vpop.f32.mrb[44].mxu0 }
 0x141   :  { %v883_v45 = vadd.f32 %v3388_v44, %v4444_v52  ;;  %v877_v46 = vpop.f32.mrb[45].mxu0 }
 0x142   :  { %v4618_v47 = vpack.c.bf16 %v1339_v43, %v1338_v11  ;;  %v878_v49 = vadd.f32 %v4444_v52, %v877_v46 }
 0x143   :  { %v1341_v50 = vmax.f32 %v883_v45, 0.0 }
 0x144   :  { %v1340_v20 = vmax.f32 %v878_v49, 0.0  ;;  %v3391_v51 = vpop.f32.mrb[46].mxu0 }
 0x145   :  { %v893_v53 = vadd.f32 %v3391_v51, %v4444_v52  ;;  %v887_v54 = vpop.f32.mrb[47].mxu0 }
 0x146   :  { %v4622_v55 = vpack.c.bf16 %v1341_v50, %v1340_v20  ;;  %v888_v56 = vadd.f32 %v4444_v52, %v887_v54 }
 0x147   :  { %v1343_v57 = vmax.f32 %v893_v53, 0.0 }
 0x148   :  { %v1342_v29 = vmax.f32 %v888_v56, 0.0  ;;  %v3394_v59 = vpop.f32.mrb[48].mxu0 }
 0x149   :  { %v903_v60 = vadd.f32 %v3394_v59, %v4444_v52  ;;  %v897_v61 = vpop.f32.mrb[49].mxu0 }
 0x14a   :  { %v4626_v62 = vpack.c.bf16 %v1343_v57, %v1342_v29  ;;  %v898_v63 = vadd.f32 %v4444_v52, %v897_v61 }
 0x14b   :  { %v1345_v0 = vmax.f32 %v903_v60, 0.0  ;;  %v4655_v60 = vld [vmem:[%s5067_s23 + $0x10] sm:$0xff] }
 0x14c   :  { %v1344_v39 = vmax.f32 %v898_v63, 0.0  ;;  %v3397_v1 = vpop.f32.mrb[50].mxu0 }
 0x14d   :  { %v913_v2 = vadd.f32 %v3397_v1, %v4444_v52  ;;  %v907_v5 = vpop.f32.mrb[51].mxu0 }
 0x14e   :  { %v3703_v48 = vpack.c.bf16 %v1345_v0, %v1344_v39  ;;  %v908_v7 = vadd.f32 %v4444_v52, %v907_v5 }
 0x14f   :  { %v1347_v8 = vmax.f32 %v913_v2, 0.0 }
 0x150   :  { %v1346_v9 = vmax.f32 %v908_v7, 0.0  ;;  %v3400_v10 = vpop.f32.mrb[52].mxu0  ;;  %3704 = vmatprep.subr.bf16.mxu1 %v3703_v48 }
 0x151   :  { %v923_v58 = vadd.f32 %v3400_v10, %v4444_v52  ;;  %v917_v13 = vpop.f32.mrb[53].mxu0  ;;  %3706 = vmatpush3.bf16.msra.mxu1 %v4597_v12 }
 0x152   :  { %v3707_v14 = vpack.c.bf16 %v1347_v8, %v1346_v9  ;;  %v918_v15 = vadd.f32 %v4444_v52, %v917_v13 }
 0x153   :  { %v1349_v16 = vmax.f32 %v923_v58, 0.0 }
 0x154   :  { %v1348_v17 = vmax.f32 %v918_v15, 0.0  ;;  %v3403_v18 = vpop.f32.mrb[54].mxu0  ;;  %3708 = vmatprep.subr.bf16.mxu1 %v3707_v14 }
 0x155   :  { %v933_v3 = vadd.f32 %v3403_v18, %v4444_v52  ;;  %v927_v21 = vpop.f32.mrb[55].mxu0  ;;  %3710 = vmatpush3.bf16.msra.mxu1 %v4602_v19 }
 0x156   :  { %v3711_v22 = vpack.c.bf16 %v1349_v16, %v1348_v17  ;;  %v928_v23 = vadd.f32 %v4444_v52, %v927_v21 }
 0x157   :  { %v1351_v24 = vmax.f32 %v933_v3, 0.0 }
 0x158   :  { %v1350_v25 = vmax.f32 %v928_v23, 0.0  ;;  %v3406_v27 = vpop.f32.mrb[56].mxu0  ;;  %3712 = vmatprep.subr.bf16.mxu1 %v3711_v22 }
 0x159   :  { %v943_v12 = vadd.f32 %v3406_v27, %v4444_v52  ;;  %v937_v28 = vpop.f32.mrb[57].mxu0  ;;  %3714 = vmatpush3.bf16.msra.mxu1 %v4606_v26 }
 0x15a   :  { %v3715_v38 = vpack.c.bf16 %v1351_v24, %v1350_v25  ;;  %v938_v30 = vadd.f32 %v4444_v52, %v937_v28 }
 0x15b   :  { %v1353_v31 = vmax.f32 %v943_v12, 0.0 }
 0x15c   :  { %v1352_v32 = vmax.f32 %v938_v30, 0.0  ;;  %v3409_v34 = vpop.f32.mrb[58].mxu0  ;;  %3716 = vmatprep.subr.bf16.mxu1 %v3715_v38 }
 0x15d   :  { %v953_v19 = vadd.f32 %v3409_v34, %v4444_v52  ;;  %v947_v35 = vpop.f32.mrb[59].mxu0  ;;  %3718 = vmatpush3.bf16.msra.mxu1 %v4610_v33 }
 0x15e   :  { %v3719_v4 = vpack.c.bf16 %v1353_v31, %v1352_v32  ;;  %v948_v36 = vadd.f32 %v4444_v52, %v947_v35 }
 0x15f   :  { %v1355_v37 = vmax.f32 %v953_v19, 0.0 }
 0x160   :  { %v1354_v40 = vmax.f32 %v948_v36, 0.0  ;;  %v3412_v42 = vpop.f32.mrb[60].mxu0  ;;  %3720 = vmatprep.subr.bf16.mxu1 %v3719_v4 }
 0x161   :  { %v963_v26 = vadd.f32 %v3412_v42, %v4444_v52  ;;  %v957_v43 = vpop.f32.mrb[61].mxu0  ;;  %3722 = vmatpush3.bf16.msra.mxu1 %v4614_v41 }
 0x162   :  { %v3723_v11 = vpack.c.bf16 %v1355_v37, %v1354_v40  ;;  %v958_v44 = vadd.f32 %v4444_v52, %v957_v43 }
 0x163   :  { %v1357_v45 = vmax.f32 %v963_v26, 0.0 }
 0x164   :  { %v1356_v46 = vmax.f32 %v958_v44, 0.0  ;;  %v3415_v49 = vpop.f32.mrb[62].mxu0  ;;  %3724 = vmatprep.subr.bf16.mxu1 %v3723_v11 }
 0x165   :  { %v973_v33 = vadd.f32 %v3415_v49, %v4444_v52  ;;  %v967_v50 = vpop.f32.mrb[63].mxu0  ;;  %3726 = vmatpush3.bf16.msra.mxu1 %v4618_v47 }
 0x166   :  { %v3727_v20 = vpack.c.bf16 %v1357_v45, %v1356_v46  ;;  %v968_v51 = vadd.f32 %v4444_v52, %v967_v50 }
 0x167   :  { %v1359_v53 = vmax.f32 %v973_v33, 0.0 }
 0x168   :  { %v1358_v54 = vmax.f32 %v968_v51, 0.0  ;;  %v3418_v56 = vpop.f32.mrb[64].mxu0  ;;  %3728 = vmatprep.subr.bf16.mxu1 %v3727_v20 }
 0x169   :  { %v983_v41 = vadd.f32 %v3418_v56, %v4444_v52  ;;  %v977_v57 = vpop.f32.mrb[65].mxu0  ;;  %3730 = vmatpush3.bf16.msra.mxu1 %v4622_v55  ;;  %v1434_v55 = vcombine.high %v4655_v60, %v4655_v60 }
 0x16a   :  { %v3731_v29 = vpack.c.bf16 %v1359_v53, %v1358_v54  ;;  %v978_v59 = vadd.f32 %v4444_v52, %v977_v57 }
 0x16b   :  { %v1361_v47 = vmax.f32 %v983_v41, 0.0 }
 0x16c   :  { %v1360_v61 = vmax.f32 %v978_v59, 0.0  ;;  %v3421_v63 = vpop.f32.mrb[66].mxu0  ;;  %3732 = vmatprep.subr.bf16.mxu1 %v3731_v29 }
 0x16d   :  { %v993_v0 = vadd.f32 %v3421_v63, %v4444_v52  ;;  %v987_v39 = vpop.f32.mrb[67].mxu0  ;;  %3734 = vmatpush3.bf16.msra.mxu1 %v4626_v62 }
 0x16e   :  { %v4661_v1 = vpack.c.bf16 %v1361_v47, %v1360_v61  ;;  %v988_v2 = vadd.f32 %v4444_v52, %v987_v39 }
 0x16f   :  { %v1363_v5 = vmax.f32 %v993_v0, 0.0 }
 0x170   :  { %v1362_v48 = vmax.f32 %v988_v2, 0.0  ;;  %v3424_v7 = vpop.f32.mrb[68].mxu0  ;;  %1575 = vmatmul.mubr.f32.vlgmr.msra.gmra.mrb[2].mxu1 %v4591_v6 }
 0x171   :  { %v1003_v8 = vadd.f32 %v3424_v7, %v4444_v52  ;;  %v997_v9 = vpop.f32.mrb[69].mxu0  ;;  %1644 = vmatprep.mubr.f32.mxu1 %v1434_v55 }
 0x172   :  { %v4666_v10 = vpack.c.bf16 %v1363_v5, %v1362_v48  ;;  %v998_v62 = vadd.f32 %v4444_v52, %v997_v9 }
 0x173   :  { %v1365_v58 = vmax.f32 %v1003_v8, 0.0 }
 0x174   :  { %v1364_v13 = vmax.f32 %v998_v62, 0.0  ;;  %v3427_v14 = vpop.f32.mrb[70].mxu0 }
 0x175   :  { %v1013_v15 = vadd.f32 %v3427_v14, %v4444_v52  ;;  %v1007_v16 = vpop.f32.mrb[71].mxu0 }
 0x176   :  { %v4670_v17 = vpack.c.bf16 %v1365_v58, %v1364_v13  ;;  %v1008_v18 = vadd.f32 %v4444_v52, %v1007_v16 }
 0x177   :  { %v1367_v3 = vmax.f32 %v1013_v15, 0.0 }
 0x178   :  { %v1366_v6 = vmax.f32 %v1008_v18, 0.0  ;;  %v3430_v21 = vpop.f32.mrb[72].mxu0 }
 0x179   :  { %v1023_v22 = vadd.f32 %v3430_v21, %v4444_v52  ;;  %v1017_v23 = vpop.f32.mrb[73].mxu0 }
 0x17a   :  { %v4674_v24 = vpack.c.bf16 %v1367_v3, %v1366_v6  ;;  %v1018_v25 = vadd.f32 %v4444_v52, %v1017_v23 }
 0x17b   :  { %v1369_v27 = vmax.f32 %v1023_v22, 0.0 }
 0x17c   :  { %v1368_v12 = vmax.f32 %v1018_v25, 0.0  ;;  %v3433_v28 = vpop.f32.mrb[74].mxu0 }
 0x17d   :  { %v1033_v38 = vadd.f32 %v3433_v28, %v4444_v52  ;;  %v1027_v30 = vpop.f32.mrb[75].mxu0 }
 0x17e   :  { %v4678_v31 = vpack.c.bf16 %v1369_v27, %v1368_v12  ;;  %v1028_v32 = vadd.f32 %v4444_v52, %v1027_v30 }
 0x17f   :  { %v1371_v34 = vmax.f32 %v1033_v38, 0.0 }
 0x180   :  { %v1370_v19 = vmax.f32 %v1028_v32, 0.0  ;;  %v3436_v35 = vpop.f32.mrb[76].mxu0 }
 0x181   :  { %v1043_v4 = vadd.f32 %v3436_v35, %v4444_v52  ;;  %v1037_v36 = vpop.f32.mrb[77].mxu0 }
 0x182   :  { %v4682_v37 = vpack.c.bf16 %v1371_v34, %v1370_v19  ;;  %v1038_v40 = vadd.f32 %v4444_v52, %v1037_v36 }
 0x183   :  { %v1373_v42 = vmax.f32 %v1043_v4, 0.0 }
 0x184   :  { %v1372_v26 = vmax.f32 %v1038_v40, 0.0  ;;  %v3439_v43 = vpop.f32.mrb[78].mxu0 }
 0x185   :  { %v1053_v11 = vadd.f32 %v3439_v43, %v4444_v52  ;;  %v1047_v44 = vpop.f32.mrb[79].mxu0 }
 0x186   :  { %v4686_v45 = vpack.c.bf16 %v1373_v42, %v1372_v26  ;;  %v1048_v46 = vadd.f32 %v4444_v52, %v1047_v44 }
 0x187   :  { %v1375_v49 = vmax.f32 %v1053_v11, 0.0 }
 0x188   :  { %v1374_v33 = vmax.f32 %v1048_v46, 0.0  ;;  %v3442_v50 = vpop.f32.mrb[80].mxu0 }
 0x189   :  { %v1063_v20 = vadd.f32 %v3442_v50, %v4444_v52  ;;  %v1057_v51 = vpop.f32.mrb[81].mxu0 }
 0x18a   :  { %v4690_v53 = vpack.c.bf16 %v1375_v49, %v1374_v33  ;;  %v1058_v54 = vadd.f32 %v4444_v52, %v1057_v51 }
 0x18b   :  { %v1377_v56 = vmax.f32 %v1063_v20, 0.0  ;;  %v4719_v20 = vld [vmem:[%s5067_s23 + $0x18] sm:$0xff] }
 0x18c   :  { %v1376_v41 = vmax.f32 %v1058_v54, 0.0  ;;  %v3445_v57 = vpop.f32.mrb[82].mxu0 }
 0x18d   :  { %v1073_v29 = vadd.f32 %v3445_v57, %v4444_v52  ;;  %v1067_v59 = vpop.f32.mrb[83].mxu0 }
 0x18e   :  { %v3735_v47 = vpack.c.bf16 %v1377_v56, %v1376_v41  ;;  %v1068_v61 = vadd.f32 %v4444_v52, %v1067_v59 }
 0x18f   :  { %v1379_v63 = vmax.f32 %v1073_v29, 0.0 }
 0x190   :  { %v1378_v0 = vmax.f32 %v1068_v61, 0.0  ;;  %v3448_v39 = vpop.f32.mrb[84].mxu0  ;;  %3736 = vmatprep.subr.bf16.mxu1 %v3735_v47 }
 0x191   :  { %v1083_v55 = vadd.f32 %v3448_v39, %v4444_v52  ;;  %v1077_v2 = vpop.f32.mrb[85].mxu0  ;;  %3738 = vmatpush3.bf16.msra.mxu1 %v4661_v1 }
 0x192   :  { %v3739_v5 = vpack.c.bf16 %v1379_v63, %v1378_v0  ;;  %v1078_v48 = vadd.f32 %v4444_v52, %v1077_v2 }
 0x193   :  { %v1381_v7 = vmax.f32 %v1083_v55, 0.0 }
 0x194   :  { %v1380_v8 = vmax.f32 %v1078_v48, 0.0  ;;  %v3451_v9 = vpop.f32.mrb[86].mxu0  ;;  %3740 = vmatprep.subr.bf16.mxu1 %v3739_v5 }
 0x195   :  { %v1093_v62 = vadd.f32 %v3451_v9, %v4444_v52  ;;  %v1087_v58 = vpop.f32.mrb[87].mxu0  ;;  %3742 = vmatpush3.bf16.msra.mxu1 %v4666_v10 }
 0x196   :  { %v3743_v13 = vpack.c.bf16 %v1381_v7, %v1380_v8  ;;  %v1088_v14 = vadd.f32 %v4444_v52, %v1087_v58 }
 0x197   :  { %v1383_v15 = vmax.f32 %v1093_v62, 0.0 }
 0x198   :  { %v1382_v16 = vmax.f32 %v1088_v14, 0.0  ;;  %v3454_v18 = vpop.f32.mrb[88].mxu0  ;;  %3744 = vmatprep.subr.bf16.mxu1 %v3743_v13 }
 0x199   :  { %v1103_v1 = vadd.f32 %v3454_v18, %v4444_v52  ;;  %v1097_v3 = vpop.f32.mrb[89].mxu0  ;;  %3746 = vmatpush3.bf16.msra.mxu1 %v4670_v17 }
 0x19a   :  { %v3747_v6 = vpack.c.bf16 %v1383_v15, %v1382_v16  ;;  %v1098_v21 = vadd.f32 %v4444_v52, %v1097_v3 }
 0x19b   :  { %v1385_v22 = vmax.f32 %v1103_v1, 0.0 }
 0x19c   :  { %v1384_v23 = vmax.f32 %v1098_v21, 0.0  ;;  %v3457_v25 = vpop.f32.mrb[90].mxu0  ;;  %3748 = vmatprep.subr.bf16.mxu1 %v3747_v6 }
 0x19d   :  { %v1113_v10 = vadd.f32 %v3457_v25, %v4444_v52  ;;  %v1107_v27 = vpop.f32.mrb[91].mxu0  ;;  %3750 = vmatpush3.bf16.msra.mxu1 %v4674_v24 }
 0x19e   :  { %v3751_v12 = vpack.c.bf16 %v1385_v22, %v1384_v23  ;;  %v1108_v28 = vadd.f32 %v4444_v52, %v1107_v27 }
 0x19f   :  { %v1387_v38 = vmax.f32 %v1113_v10, 0.0 }
 0x1a0   :  { %v1386_v30 = vmax.f32 %v1108_v28, 0.0  ;;  %v3460_v32 = vpop.f32.mrb[92].mxu0  ;;  %3752 = vmatprep.subr.bf16.mxu1 %v3751_v12 }
 0x1a1   :  { %v1123_v17 = vadd.f32 %v3460_v32, %v4444_v52  ;;  %v1117_v34 = vpop.f32.mrb[93].mxu0  ;;  %3754 = vmatpush3.bf16.msra.mxu1 %v4678_v31 }
 0x1a2   :  { %v3755_v19 = vpack.c.bf16 %v1387_v38, %v1386_v30  ;;  %v1118_v35 = vadd.f32 %v4444_v52, %v1117_v34 }
 0x1a3   :  { %v1389_v4 = vmax.f32 %v1123_v17, 0.0 }
 0x1a4   :  { %v1388_v36 = vmax.f32 %v1118_v35, 0.0  ;;  %v3463_v40 = vpop.f32.mrb[94].mxu0  ;;  %3756 = vmatprep.subr.bf16.mxu1 %v3755_v19 }
 0x1a5   :  { %v1133_v24 = vadd.f32 %v3463_v40, %v4444_v52  ;;  %v1127_v42 = vpop.f32.mrb[95].mxu0  ;;  %3758 = vmatpush3.bf16.msra.mxu1 %v4682_v37 }
 0x1a6   :  { %v3759_v26 = vpack.c.bf16 %v1389_v4, %v1388_v36  ;;  %v1128_v43 = vadd.f32 %v4444_v52, %v1127_v42 }
 0x1a7   :  { %v1391_v11 = vmax.f32 %v1133_v24, 0.0 }
 0x1a8   :  { %v1390_v44 = vmax.f32 %v1128_v43, 0.0  ;;  %v3466_v46 = vpop.f32.mrb[96].mxu0  ;;  %3760 = vmatprep.subr.bf16.mxu1 %v3759_v26 }
 0x1a9   :  { %v1143_v31 = vadd.f32 %v3466_v46, %v4444_v52  ;;  %v1137_v49 = vpop.f32.mrb[97].mxu0  ;;  %3762 = vmatpush3.bf16.msra.mxu1 %v4686_v45  ;;  %v1435_v45 = vcombine.high %v4719_v20, %v4719_v20 }
 0x1aa   :  { %v3763_v33 = vpack.c.bf16 %v1391_v11, %v1390_v44  ;;  %v1138_v50 = vadd.f32 %v4444_v52, %v1137_v49 }
 0x1ab   :  { %v1393_v37 = vmax.f32 %v1143_v31, 0.0 }
 0x1ac   :  { %v1392_v51 = vmax.f32 %v1138_v50, 0.0  ;;  %v3469_v54 = vpop.f32.mrb[98].mxu0  ;;  %3764 = vmatprep.subr.bf16.mxu1 %v3763_v33 }
 0x1ad   :  { %v1153_v56 = vadd.f32 %v3469_v54, %v4444_v52  ;;  %v1147_v41 = vpop.f32.mrb[99].mxu0  ;;  %3766 = vmatpush3.bf16.msra.mxu1 %v4690_v53 }
 0x1ae   :  { %v4725_v57 = vpack.c.bf16 %v1393_v37, %v1392_v51  ;;  %v1148_v29 = vadd.f32 %v4444_v52, %v1147_v41 }
 0x1af   :  { %v1395_v59 = vmax.f32 %v1153_v56, 0.0 }
 0x1b0   :  { %v1394_v47 = vmax.f32 %v1148_v29, 0.0  ;;  %v3472_v61 = vpop.f32.mrb[100].mxu0  ;;  %1645 = vmatmul.mubr.f32.vlgmr.msra.gmra.mrb[4].mxu1 %v4655_v60 }
 0x1b1   :  { %v1163_v63 = vadd.f32 %v3472_v61, %v4444_v52  ;;  %v1157_v0 = vpop.f32.mrb[101].mxu0  ;;  %1714 = vmatprep.mubr.f32.mxu1 %v1435_v45 }
 0x1b2   :  { %v4730_v39 = vpack.c.bf16 %v1395_v59, %v1394_v47  ;;  %v1158_v53 = vadd.f32 %v4444_v52, %v1157_v0  ;;  %v3886_v47 = vld [vmem:[%s5068_s24] ss:$0 sm:$0xff] }
 0x1b3   :  { %v1397_v55 = vmax.f32 %v1163_v63, 0.0 }
 0x1b4   :  { %v1396_v2 = vmax.f32 %v1158_v53, 0.0  ;;  %v3475_v5 = vpop.f32.mrb[102].mxu0 }
 0x1b5   :  { %v1173_v48 = vadd.f32 %v3475_v5, %v4444_v52  ;;  %v1167_v7 = vpop.f32.mrb[103].mxu0 }
 0x1b6   :  { %v4734_v8 = vpack.c.bf16 %v1397_v55, %v1396_v2  ;;  %v1168_v9 = vadd.f32 %v4444_v52, %v1167_v7 }
 0x1b7   :  { %v1399_v62 = vmax.f32 %v1173_v48, 0.0 }
 0x1b8   :  { %v1398_v60 = vmax.f32 %v1168_v9, 0.0  ;;  %v3478_v58 = vpop.f32.mrb[104].mxu0 }
 0x1b9   :  { %v1183_v13 = vadd.f32 %v3478_v58, %v4444_v52  ;;  %v1177_v14 = vpop.f32.mrb[105].mxu0 }
 0x1ba   :  { %v4738_v15 = vpack.c.bf16 %v1399_v62, %v1398_v60  ;;  %v1178_v16 = vadd.f32 %v4444_v52, %v1177_v14 }
 0x1bb   :  { %v1401_v18 = vmax.f32 %v1183_v13, 0.0 }
 0x1bc   :  { %v1400_v1 = vmax.f32 %v1178_v16, 0.0  ;;  %v3481_v3 = vpop.f32.mrb[106].mxu0 }
 0x1bd   :  { %v1193_v6 = vadd.f32 %v3481_v3, %v4444_v52  ;;  %v1187_v21 = vpop.f32.mrb[107].mxu0 }
 0x1be   :  { %v4742_v22 = vpack.c.bf16 %v1401_v18, %v1400_v1  ;;  %v1188_v23 = vadd.f32 %v4444_v52, %v1187_v21 }
 0x1bf   :  { %v1403_v25 = vmax.f32 %v1193_v6, 0.0 }
 0x1c0   :  { %v1402_v10 = vmax.f32 %v1188_v23, 0.0  ;;  %v3484_v27 = vpop.f32.mrb[108].mxu0 }
 0x1c1   :  { %v1203_v12 = vadd.f32 %v3484_v27, %v4444_v52  ;;  %v1197_v28 = vpop.f32.mrb[109].mxu0 }
 0x1c2   :  { %v4746_v38 = vpack.c.bf16 %v1403_v25, %v1402_v10  ;;  %v1198_v30 = vadd.f32 %v4444_v52, %v1197_v28 }
 0x1c3   :  { %v1405_v32 = vmax.f32 %v1203_v12, 0.0 }
 0x1c4   :  { %v1404_v17 = vmax.f32 %v1198_v30, 0.0  ;;  %v3487_v34 = vpop.f32.mrb[110].mxu0 }
 0x1c5   :  { %v1213_v19 = vadd.f32 %v3487_v34, %v4444_v52  ;;  %v1207_v35 = vpop.f32.mrb[111].mxu0 }
 0x1c6   :  { %v4750_v4 = vpack.c.bf16 %v1405_v32, %v1404_v17  ;;  %v1208_v36 = vadd.f32 %v4444_v52, %v1207_v35 }
 0x1c7   :  { %v1407_v40 = vmax.f32 %v1213_v19, 0.0 }
 0x1c8   :  { %v1406_v24 = vmax.f32 %v1208_v36, 0.0  ;;  %v3490_v42 = vpop.f32.mrb[112].mxu0 }
 0x1c9   :  { %v1223_v26 = vadd.f32 %v3490_v42, %v4444_v52  ;;  %v1217_v43 = vpop.f32.mrb[113].mxu0  ;;  %v3887_v42 = vmov 0.0|0.0  }
 0x1ca   :  { %v4754_v11 = vpack.c.bf16 %v1407_v40, %v1406_v24  ;;  %v1218_v44 = vadd.f32 %v4444_v52, %v1217_v43 }
 0x1cb   :  { %v1409_v46 = vmax.f32 %v1223_v26, 0.0  ;;  %v1722_v26 = vld [vmem:[%s5041_s5 + $0x10] sm:$0xff] }
 0x1cc   :  { %v1408_v31 = vmax.f32 %v1218_v44, 0.0  ;;  %v3493_v49 = vpop.f32.mrb[114].mxu0  ;;  %v1724_v44 = vld [vmem:[%s5041_s5 + $0x20] sm:$0xff] }
 0x1cd   :  { %v1233_v33 = vadd.f32 %v3493_v49, %v4444_v52  ;;  %v1227_v50 = vpop.f32.mrb[115].mxu0 }
 0x1ce   :  { %v3767_v37 = vpack.c.bf16 %v1409_v46, %v1408_v31  ;;  %v1228_v51 = vadd.f32 %v4444_v52, %v1227_v50  ;;  %v1725_v46 = vld [vmem:[%s5041_s5 + $0x28] sm:$0xff]  ;;  %v1727_v50 = vld [vmem:[%s5041_s5 + $0x38] sm:$0xff] }
 0x1cf   :  { %v1411_v54 = vmax.f32 %v1233_v33, 0.0  ;;  %v3806_v31 = vpack.c.bf16 %v1725_v46, %v1724_v44  ;;  %v1726_v33 = vld [vmem:[%s5041_s5 + $0x30] sm:$0xff]  ;;  %v2228_v46 = vld [vmem:[%s5046_s11 + $0x38] sm:$0xff] }
 0x1d0   :  { %v1410_v56 = vmax.f32 %v1228_v51, 0.0  ;;  %v3496_v41 = vpop.f32.mrb[116].mxu0  ;;  %3768 = vmatprep.subr.bf16.mxu1 %v3767_v37  ;;  %v3809_v51 = vpack.c.bf16 %v1727_v50, %v1726_v33  ;;  %v2227_v44 = vld [vmem:[%s5046_s11 + $0x30] sm:$0xff] }
 0x1d1   :  { %v1243_v45 = vadd.f32 %v3496_v41, %v4444_v52  ;;  %v1237_v29 = vpop.f32.mrb[117].mxu0  ;;  %3770 = vmatpush3.bf16.msra.mxu1 %v4725_v57  ;;  %v3889_v41 = vmov 0.0  }
 0x1d2   :  { %v3771_v59 = vpack.c.bf16 %v1411_v54, %v1410_v56  ;;  %v1238_v61 = vadd.f32 %v3886_v47, %v1237_v29 }
 0x1d3   :  { %v1413_v63 = vmax.f32 %v1243_v45, 0.0 }
 0x1d4   :  { %v1412_v0 = vmax.f32 %v1238_v61, 0.0  ;;  %v3499_v53 = vpop.f32.mrb[118].mxu0  ;;  %3772 = vmatprep.subr.bf16.mxu1 %v3771_v59 }
 0x1d5   :  { %v1253_v55 = vadd.f32 %v3886_v47, %v3499_v53  ;;  %v1247_v2 = vpop.f32.mrb[119].mxu0  ;;  %3774 = vmatpush3.bf16.msra.mxu1 %v4730_v39 }
 0x1d6   :  { %v3775_v5 = vpack.c.bf16 %v1413_v63, %v1412_v0  ;;  %v1248_v48 = vadd.f32 %v3886_v47, %v1247_v2 }
 0x1d7   :  { %v1415_v52 = vmax.f32 %v1253_v55, 0.0  ;;  %v4809_v55 = vld [vmem:[%s5042_s4] sm:$0xf] }
 0x1d8   :  { %v1414_v7 = vmax.f32 %v1248_v48, 0.0  ;;  %v3502_v9 = vpop.f32.mrb[120].mxu0  ;;  %3776 = vmatprep.subr.bf16.mxu1 %v3775_v5 }
 0x1d9   :  { %v1263_v57 = vadd.f32 %v3886_v47, %v3502_v9  ;;  %v1257_v62 = vpop.f32.mrb[121].mxu0  ;;  %3778 = vmatpush3.bf16.msra.mxu1 %v4734_v8 }
 0x1da   :  { %v3779_v60 = vpack.c.bf16 %v1415_v52, %v1414_v7  ;;  %v1258_v58 = vadd.f32 %v3886_v47, %v1257_v62  ;;  %v1974_v62 = vld [vmem:[%s5043_s8 + $0x8] sm:$0xff] }
 0x1db   :  { %v1417_v13 = vmax.f32 %v1263_v57, 0.0  ;;  %v1973_v57 = vld [vmem:[%s5043_s8] sm:$0xff] }
 0x1dc   :  { %v1416_v14 = vmax.f32 %v1258_v58, 0.0  ;;  %v3505_v16 = vpop.f32.mrb[122].mxu0  ;;  %3780 = vmatprep.subr.bf16.mxu1 %v3779_v60  ;;  %v3812_v60 = vpack.c.bf16 %v1974_v62, %v1973_v57  ;;  %v1975_v58 = vld [vmem:[%s5043_s8 + $0x10] sm:$0xff]  ;;  %v2463_v62 = vld [vmem:[%s5050_s13 + $0x18] sm:$0xff] }
 0x1dd   :  { %v1273_v18 = vadd.f32 %v3886_v47, %v3505_v16  ;;  %v1267_v1 = vpop.f32.mrb[123].mxu0  ;;  %3782 = vmatpush3.bf16.msra.mxu1 %v4738_v15  ;;  %v1977_v16 = vld [vmem:[%s5043_s8 + $0x20] sm:$0xff]  ;;  %v2462_v57 = vld [vmem:[%s5050_s13 + $0x10] sm:$0xff] }
 0x1de   :  { %v3783_v39 = vpack.c.bf16 %v1417_v13, %v1416_v14  ;;  %v1268_v3 = vadd.f32 %v3886_v47, %v1267_v1  ;;  %v1976_v13 = vld [vmem:[%s5043_s8 + $0x18] sm:$0xff] }
 0x1df   :  { %v1419_v6 = vmax.f32 %v1273_v18, 0.0  ;;  %v3815_v14 = vpack.c.bf16 %v1976_v13, %v1975_v58  ;;  %v1978_v18 = vld [vmem:[%s5043_s8 + $0x28] sm:$0xff]  ;;  %v2464_v58 = vld [vmem:[%s5050_s13 + $0x20] sm:$0xff] }
 0x1e0   :  { %v1418_v21 = vmax.f32 %v1268_v3, 0.0  ;;  %v3508_v23 = vpop.f32.mrb[124].mxu0  ;;  %3784 = vmatprep.subr.bf16.mxu1 %v3783_v39  ;;  %v3818_v1 = vpack.c.bf16 %v1978_v18, %v1977_v16  ;;  %v1979_v39 = vld [vmem:[%s5043_s8 + $0x30] sm:$0xff]  ;;  %v1980_v3 = vld [vmem:[%s5043_s8 + $0x38] sm:$0xff]  ;;  %v2465_v13 = vld [vmem:[%s5050_s13 + $0x28] sm:$0xff] }
 0x1e1   :  { %v1283_v25 = vadd.f32 %v3886_v47, %v3508_v23  ;;  %v1277_v10 = vpop.f32.mrb[125].mxu0  ;;  %3786 = vmatpush3.bf16.msra.mxu1 %v4742_v22  ;;  %v2466_v16 = vld [vmem:[%s5050_s13 + $0x30] sm:$0xff]  ;;  %v2467_v18 = vld [vmem:[%s5050_s13 + $0x38] sm:$0xff] }
 0x1e2   :  { %v3787_v8 = vpack.c.bf16 %v1419_v6, %v1418_v21  ;;  %v1278_v27 = vadd.f32 %v3886_v47, %v1277_v10  ;;  %v3821_v6 = vpack.c.bf16 %v1980_v3, %v1979_v39  ;;  %v2468_v39 = vld [vmem:[%s5050_s13 + $0x40] sm:$0xff]  ;;  %v2469_v3 = vld [vmem:[%s5050_s13 + $0x48] sm:$0xff] }
 0x1e3   :  { %v1421_v12 = vmax.f32 %v1283_v25, 0.0 }
 0x1e4   :  { %v1420_v28 = vmax.f32 %v1278_v27, 0.0  ;;  %v3511_v30 = vpop.f32.mrb[126].mxu0  ;;  %3788 = vmatprep.subr.bf16.mxu1 %v3787_v8  ;;  %v2945_v8 = vld [vmem:[%s5044_s6] ss:$0 sm:$0xff] }
 0x1e5   :  { %v1293_v32 = vadd.f32 %v3886_v47, %v3511_v30  ;;  %v1287_v17 = vpop.f32.mrb[127].mxu0  ;;  %3790 = vmatpush3.bf16.msra.mxu1 %v4746_v38  ;;  %v1720_v38 = vld [vmem:[%s5041_s5] sm:$0xff] }
 0x1e6   :  { %v3791_v15 = vpack.c.bf16 %v1421_v12, %v1420_v28  ;;  %v1288_v34 = vadd.f32 %v3886_v47, %v1287_v17  ;;  %v2946_v12 = vld [vmem:[%s5045_s7] ss:$0 sm:$0xff] }
 0x1e7   :  { %v1423_v19 = vmax.f32 %v1293_v32, 0.0 }
 0x1e8   :  { %v1422_v35 = vmax.f32 %v1288_v34, 0.0  ;;  %3792 = vmatprep.subr.bf16.mxu1 %v3791_v15 }
 0x1e9   :  { %3794 = vmatpush3.bf16.msra.mxu1 %v4750_v4  ;;  %v1721_v4 = vld [vmem:[%s5041_s5 + $0x8] sm:$0xff] }
 0x1ea   :  { %v3795_v36 = vpack.c.bf16 %v1423_v19, %v1422_v35  ;;  %v3800_v43 = vpack.c.bf16 %v1721_v4, %v1720_v38  ;;  %v2223_v38 = vld [vmem:[%s5046_s11 + $0x10] sm:$0xff]  ;;  %v2224_v4 = vld [vmem:[%s5046_s11 + $0x18] sm:$0xff] }
 0x1ec   :  { %3796 = vmatprep.subr.bf16.mxu1 %v3795_v36 }
 0x1ed   :  { %3798 = vmatpush3.bf16.msra.mxu1 %v4754_v11 }
 0x1ee   :  { %3799 = vmatprep.subr.bf16.mxu1 %v3887_v42 }
 0x1f0   :  { %1715 = vmatmul.mubr.f32.vlgmr.msra.gmra.mrb[6].mxu1 %v4719_v20  ;;  %v1723_v20 = vld [vmem:[%s5041_s5 + $0x18] sm:$0xff] }
 0x1f1   :  { %3801 = vmatpush3.bf16.msra.mxu1 %v3800_v43  ;;  %v3803_v11 = vpack.c.bf16 %v1723_v20, %v1722_v26  ;;  %3528 = vmatprep.mubr.msk.f32.mxu1 %vm3888_vm2, %v3889_v41  ;;  %v3827_v26 = vpack.c.bf16 %v2224_v4, %v2223_v38  ;;  %v2225_v43 = vld [vmem:[%s5046_s11 + $0x20] sm:$0xff]  ;;  %v2226_v20 = vld [vmem:[%s5046_s11 + $0x28] sm:$0xff] }
 0x1f2   :  { %3802 = vmatprep.subr.bf16.mxu1 %v3887_v42  ;;  %v2713_v4 = vld [vmem:[%s5052_s16] sm:$0xff] }
 0x1f5   :  { %3804 = vmatpush3.bf16.msra.mxu1 %v3803_v11  ;;  %v3830_v11 = vpack.c.bf16 %v2226_v20, %v2225_v43 }
 0x1f6   :  { %3805 = vmatprep.subr.bf16.mxu1 %v3887_v42 }
 0x1f9   :  { %3807 = vmatpush3.bf16.msra.mxu1 %v3806_v31  ;;  %v3833_v31 = vpack.c.bf16 %v2228_v46, %v2227_v44  ;;  %v2718_v44 = vld [vmem:[%s5052_s16 + $0x28] sm:$0xff] }
 0x1fa   :  { %3808 = vmatprep.subr.bf16.mxu1 %v3887_v42 }
 0x1fd   :  { %3810 = vmatpush3.bf16.msra.mxu1 %v3809_v51  ;;  %v2952_v51 = vld [vmem:[%s5047_s9] ss:$0 sm:$0xff] }
 0x1fe   :  { %3531 = vmatprep.subr.mxu1 %v3889_v41 }
 0x203   :  { %v3133_v22 = vpop.f32.mrb[0].mxu1 }
 0x204   :  { %v3134_v40 = vpop.f32.mrb[1].mxu1 }
 0x205   :  { %v3135_v24 = vadd.f32 %v3134_v40, %v3133_v22  ;;  %v2221_v22 = vld [vmem:[%s5046_s11] sm:$0xff]  ;;  %v2222_v40 = vld [vmem:[%s5046_s11 + $0x8] sm:$0xff] }
 0x243   :  { %v3168_v49 = vpop.f32.mrb[2].mxu1 }
 0x244   :  { %v3169_v37 = vpop.f32.mrb[3].mxu1 }
 0x245   :  { %v3170_v54 = vadd.f32 %v3169_v37, %v3168_v49 }
 0x247   :  { %v1577_v56 = vadd.f32 %v3170_v54, %v3135_v24  ;;  %v3824_v24 = vpack.c.bf16 %v2222_v40, %v2221_v22 }
 0x283   :  { %v3203_v45 = vpop.f32.mrb[4].mxu1 }
 0x284   :  { %v3204_v29 = vpop.f32.mrb[5].mxu1 }
 0x285   :  { %v3205_v59 = vadd.f32 %v3204_v29, %v3203_v45 }
 0x287   :  { %v1647_v47 = vadd.f32 %v3205_v59, %v1577_v56  ;;  %v2953_v56 = vld [vmem:[%s5048_s10] ss:$0 sm:$0xff] }
 0x2c3   :  { %v3238_v61 = vpop.f32.mrb[6].mxu1 }
 0x2c4   :  { %v3239_v63 = vpop.f32.mrb[7].mxu1 }
 0x2c5   :  { %v3240_v0 = vadd.f32 %v3239_v63, %v3238_v61 }
 0x2c7   :  { %v1717_v53 = vadd.f32 %v3240_v0, %v1647_v47  ;;  %v2954_v47 = vld [vmem:[%s5049_s12] ss:$0 sm:$0xff] }
 0x2c9   :  { %3529 = vmatmul.mubr.msk.f32.vlgmr.msra.gmra.mrb[8].mxu1 %vm1728_vm3, %v1717_v53 }
 0x2ca   :  { %3533 = vmatprep.mubr.msk.f32.mxu1 %vm3888_vm2, %v3889_v41 }
 0x39c   :  { %v1798_v2 = vpop.f32.mrb[8].mxu1 }
 0x39d   :  { %v3530_v5 = vpop.f32.mrb[9].mxu1  ;;  %3532 = vmatpush3.msk.msra.mxu1 %vm587_vm1, %v1798_v2 }
 0x39e   :  { %3534 = vmatmul.mubr.msk.f32.vlgmr.msra.gmra.mrb[10].mxu1 %vm1804_vm4, %v4809_v55  ;;  %3536 = vmatprep.subr.mxu1 %v3889_v41  ;;  %v2461_v5 = vld [vmem:[%s5050_s13 + $0x8] sm:$0xff] }
 0x39f   :  { %3538 = vmatprep.mubr.msk.f32.mxu1 %vm3888_vm2, %v3889_v41 }
 0x471   :  { %v1877_v48 = vpop.f32.mrb[10].mxu1 }
 0x472   :  { %v1881_v52 = vsub.f32 %v1798_v2, %v1877_v48  ;;  %v3535_v7 = vpop.f32.mrb[11].mxu1  ;;  %v2460_v2 = vld [vmem:[%s5050_s13] sm:$0xff] }
 0x474   :  { %v1882_v9 = vmul.f32 %v1881_v52, %v1881_v52 }
 0x476   :  { %3537 = vmatpush3.msk.msra.mxu1 %vm587_vm1, %v1882_v9  ;;  %v3836_v9 = vpack.c.bf16 %v2461_v5, %v2460_v2 }
 0x477   :  { %3539 = vmatmul.mubr.msk.f32.vlgmr.msra.gmra.mrb[12].mxu1 %vm1804_vm4, %v4809_v55  ;;  %3811 = vmatprep.subr.bf16.mxu1 %v3887_v42 }
 0x478   :  { %3557 = vmatprep.mubr.msk.f32.mxu1 %vm3888_vm2, %v3889_v41  ;;  %3813 = vmatpush3.bf16.msra.mxu1 %v3812_v60  ;;  %v3839_v60 = vpack.c.bf16 %v2463_v62, %v2462_v57 }
 0x479   :  { %3814 = vmatprep.subr.bf16.mxu1 %v3887_v42 }
 0x47c   :  { %3816 = vmatpush3.bf16.msra.mxu1 %v3815_v14  ;;  %v3842_v14 = vpack.c.bf16 %v2465_v13, %v2464_v58 }
 0x47d   :  { %3817 = vmatprep.subr.bf16.mxu1 %v3887_v42 }
 0x480   :  { %3819 = vmatpush3.bf16.msra.mxu1 %v3818_v1  ;;  %v3845_v1 = vpack.c.bf16 %v2467_v18, %v2466_v16 }
 0x481   :  { %3820 = vmatprep.subr.bf16.mxu1 %v3887_v42 }
 0x484   :  { %3822 = vmatpush3.bf16.msra.mxu1 %v3821_v6  ;;  %v3848_v6 = vpack.c.bf16 %v2469_v3, %v2468_v39 }
 0x485   :  { %3560 = vmatprep.subr.mxu1 %v3889_v41 }
 0x54a   :  { %v1952_v21 = vpop.f32.mrb[12].mxu1 }
 0x54b   :  { %v1953_v23 = vadd.f32 1e-05, %v1952_v21  ;;  %v3540_v25 = vpop.f32.mrb[13].mxu1  ;;  %v2470_v21 = vld [vmem:[%s5050_s13 + $0x50] sm:$0xff] }
 0x54d   :  { %3878 = vrsqrt.f32 %v1953_v23  ;;  %v2471_v23 = vld [vmem:[%s5050_s13 + $0x58] sm:$0xff] }
 0x54e   :  { %v3851_v25 = vpack.c.bf16 %v2471_v23, %v2470_v21 }
 0x557   :  { %v3879_v10 = vpop.eup %3878 }
 0x558   :  { %v1957_v27 = vmul.f32 %v3879_v10, %v1881_v52  ;;  %v2472_v10 = vld [vmem:[%s5050_s13 + $0x60] sm:$0xff] }
 0x55a   :  { %v1964_v28 = vmul.f32 %v2945_v8, %v1957_v27  ;;  %v2473_v8 = vld [vmem:[%s5050_s13 + $0x68] sm:$0xff] }
 0x55b   :  { %v3854_v27 = vpack.c.bf16 %v2473_v8, %v2472_v10 }
 0x55c   :  { %v1971_v30 = vadd.f32 %v2946_v12, %v1964_v28  ;;  %v2474_v12 = vld [vmem:[%s5050_s13 + $0x70] sm:$0xff]  ;;  %v2475_v28 = vld [vmem:[%s5050_s13 + $0x78] sm:$0xff] }
 0x55e   :  { %v1972_v32 = vmax.f32 %v1971_v30, 0.0  ;;  %v3857_v30 = vpack.c.bf16 %v2475_v28, %v2474_v12 }
 0x560   :  { %3558 = vmatmul.mubr.msk.f32.vlgmr.msra.gmra.mrb[14].mxu1 %vm1728_vm3, %v1972_v32 }
 0x561   :  { %3562 = vmatprep.mubr.msk.f32.mxu1 %vm3888_vm2, %v3889_v41 }
 0x633   :  { %v2050_v17 = vpop.f32.mrb[14].mxu1 }
 0x634   :  { %v3559_v15 = vpop.f32.mrb[15].mxu1  ;;  %3561 = vmatpush3.msk.msra.mxu1 %vm587_vm1, %v2050_v17 }
 0x635   :  { %3563 = vmatmul.mubr.msk.f32.vlgmr.msra.gmra.mrb[16].mxu1 %vm1804_vm4, %v4809_v55  ;;  %3565 = vmatprep.subr.mxu1 %v3889_v41 }
 0x636   :  { %3567 = vmatprep.mubr.msk.f32.mxu1 %vm3888_vm2, %v3889_v41 }
 0x708   :  { %v2125_v34 = vpop.f32.mrb[16].mxu1 }
 0x709   :  { %v2129_v19 = vsub.f32 %v2050_v17, %v2125_v34  ;;  %v3564_v35 = vpop.f32.mrb[17].mxu1 }
 0x70b   :  { %v2130_v36 = vmul.f32 %v2129_v19, %v2129_v19 }
 0x70d   :  { %3566 = vmatpush3.msk.msra.mxu1 %vm587_vm1, %v2130_v36 }
 0x70e   :  { %3568 = vmatmul.mubr.msk.f32.vlgmr.msra.gmra.mrb[18].mxu1 %vm1804_vm4, %v4809_v55  ;;  %3823 = vmatprep.subr.bf16.mxu1 %v3887_v42 }
 0x70f   :  { %3586 = vmatprep.mubr.msk.f32.mxu1 %vm3888_vm2, %v3889_v41  ;;  %3825 = vmatpush3.bf16.msra.mxu1 %v3824_v24 }
 0x710   :  { %3826 = vmatprep.subr.bf16.mxu1 %v3887_v42 }
 0x713   :  { %3828 = vmatpush3.bf16.msra.mxu1 %v3827_v26  ;;  %v2714_v26 = vld [vmem:[%s5052_s16 + $0x8] sm:$0xff] }
 0x714   :  { %3829 = vmatprep.subr.bf16.mxu1 %v3887_v42  ;;  %v3860_v43 = vpack.c.bf16 %v2714_v26, %v2713_v4 }
 0x717   :  { %3831 = vmatpush3.bf16.msra.mxu1 %v3830_v11  ;;  %v2717_v11 = vld [vmem:[%s5052_s16 + $0x20] sm:$0xff] }
 0x718   :  { %3832 = vmatprep.subr.bf16.mxu1 %v3887_v42  ;;  %v3866_v46 = vpack.c.bf16 %v2718_v44, %v2717_v11 }
 0x71b   :  { %3834 = vmatpush3.bf16.msra.mxu1 %v3833_v31  ;;  %v2719_v31 = vld [vmem:[%s5052_s16 + $0x30] sm:$0xff] }
 0x71c   :  { %3589 = vmatprep.subr.mxu1 %v3889_v41 }
 0x7e1   :  { %v2200_v49 = vpop.f32.mrb[18].mxu1 }
 0x7e2   :  { %v2201_v33 = vadd.f32 1e-05, %v2200_v49  ;;  %v3569_v50 = vpop.f32.mrb[19].mxu1  ;;  %v2720_v49 = vld [vmem:[%s5052_s16 + $0x38] sm:$0xff] }
 0x7e4   :  { %3880 = vrsqrt.f32 %v2201_v33  ;;  %v3869_v33 = vpack.c.bf16 %v2720_v49, %v2719_v31 }
 0x7ee   :  { %v3881_v37 = vpop.eup %3880 }
 0x7ef   :  { %v2205_v54 = vmul.f32 %v3881_v37, %v2129_v19 }
 0x7f1   :  { %v2212_v45 = vmul.f32 %v2952_v51, %v2205_v54 }
 0x7f3   :  { %v2219_v29 = vadd.f32 %v2953_v56, %v2212_v45  ;;  %v2964_v56 = vld [vmem:[%s5053_s14] ss:$0 sm:$0xff] }
 0x7f4   :  { %v2965_v45 = vld [vmem:[%s5054_s15] ss:$0 sm:$0xff] }
 0x7f5   :  { %v2220_v59 = vmax.f32 %v2219_v29, 0.0 }
 0x7f7   :  { %3587 = vmatmul.mubr.msk.f32.vlgmr.msra.gmra.mrb[20].mxu1 %vm1728_vm3, %v2220_v59 }
 0x7f8   :  { %3591 = vmatprep.mubr.msk.f32.mxu1 %vm3888_vm2, %v3889_v41 }
 0x8ca   :  { %v2305_v61 = vpop.f32.mrb[20].mxu1 }
 0x8cb   :  { %v2306_v63 = vadd.f32 %v2954_v47, %v2305_v61  ;;  %v3588_v0 = vpop.f32.mrb[21].mxu1  ;;  %v2966_v61 = vld [vmem:[%s5055_s17] ss:$0 sm:$0xff] }
 0x8cd   :  { %3590 = vmatpush3.msk.msra.mxu1 %vm587_vm1, %v2306_v63 }
 0x8ce   :  { %3592 = vmatmul.mubr.msk.f32.vlgmr.msra.gmra.mrb[22].mxu1 %vm1804_vm4, %v4809_v55  ;;  %3594 = vmatprep.subr.mxu1 %v3889_v41 }
 0x8cf   :  { %3596 = vmatprep.mubr.msk.f32.mxu1 %vm3888_vm2, %v3889_v41 }
 0x9a1   :  { %v2378_v53 = vpop.f32.mrb[22].mxu1 }
 0x9a2   :  { %v2382_v48 = vsub.f32 %v2306_v63, %v2378_v53  ;;  %v3593_v52 = vpop.f32.mrb[23].mxu1 }
 0x9a4   :  { %v2383_v7 = vmul.f32 %v2382_v48, %v2382_v48 }
 0x9a6   :  { %3595 = vmatpush3.msk.msra.mxu1 %vm587_vm1, %v2383_v7 }
 0x9a7   :  { %3597 = vmatmul.mubr.msk.f32.vlgmr.msra.gmra.mrb[24].mxu1 %vm1804_vm4, %v4809_v55  ;;  %3835 = vmatprep.subr.bf16.mxu1 %v3887_v42 }
 0x9a8   :  { %3837 = vmatpush3.bf16.msra.mxu1 %v3836_v9  ;;  %3631 = vmatprep.mubr.msk.f32.mxu1 %vm3888_vm2, %v3889_v41 }
 0x9a9   :  { %3838 = vmatprep.subr.bf16.mxu1 %v3887_v42 }
 0x9ac   :  { %3840 = vmatpush3.bf16.msra.mxu1 %v3839_v60 }
 0x9ad   :  { %3841 = vmatprep.subr.bf16.mxu1 %v3887_v42 }
 0x9b0   :  { %3843 = vmatpush3.bf16.msra.mxu1 %v3842_v14 }
 0x9b1   :  { %3844 = vmatprep.subr.bf16.mxu1 %v3887_v42 }
 0x9b4   :  { %3846 = vmatpush3.bf16.msra.mxu1 %v3845_v1 }
 0x9b5   :  { %3847 = vmatprep.subr.bf16.mxu1 %v3887_v42 }
 0x9b8   :  { %3849 = vmatpush3.bf16.msra.mxu1 %v3848_v6 }
 0x9b9   :  { %3850 = vmatprep.subr.bf16.mxu1 %v3887_v42 }
 0x9bc   :  { %3852 = vmatpush3.bf16.msra.mxu1 %v3851_v25 }
 0x9bd   :  { %3853 = vmatprep.subr.bf16.mxu1 %v3887_v42 }
 0x9c0   :  { %3855 = vmatpush3.bf16.msra.mxu1 %v3854_v27 }
 0x9c1   :  { %3856 = vmatprep.subr.bf16.mxu1 %v3887_v42 }
 0x9c4   :  { %3858 = vmatpush3.bf16.msra.mxu1 %v3857_v30 }
 0x9c5   :  { %3634 = vmatprep.subr.mxu1 %v3889_v41 }
 0xa7a   :  { %v2453_v32 = vpop.f32.mrb[24].mxu1 }
 0xa7b   :  { %v2454_v17 = vadd.f32 1e-05, %v2453_v32  ;;  %v3598_v15 = vpop.f32.mrb[25].mxu1 }
 0xa7d   :  { %3882 = vrsqrt.f32 %v2454_v17 }
 0xa87   :  { %v3883_v34 = vpop.eup %3882 }
 0xa88   :  { %v2458_v19 = vmul.f32 %v3883_v34, %v2382_v48 }
 0xa8a   :  { %2459 = vst [vmem:[%s5051_s18] sm:$0xf] %v2458_v19  ;;  %3632 = vmatmul.mubr.f32.vlgmr.msra.gmra.mrb[26].mxu1 %v2458_v19 }
 0xa8b   :  { %3636 = vmatprep.mubr.msk.f32.mxu1 %vm3888_vm2, %v3889_v41 }
 0xb5d   :  { %v2542_v35 = vpop.f32.mrb[26].mxu1 }
 0xb5e   :  { %v3633_v36 = vpop.f32.mrb[27].mxu1  ;;  %3635 = vmatpush3.msk.msra.mxu1 %vm587_vm1, %v2542_v35 }
 0xb5f   :  { %3637 = vmatmul.mubr.msk.f32.vlgmr.msra.gmra.mrb[28].mxu1 %vm1804_vm4, %v4809_v55  ;;  %3639 = vmatprep.subr.mxu1 %v3889_v41 }
 0xb60   :  { %3641 = vmatprep.mubr.msk.f32.mxu1 %vm3888_vm2, %v3889_v41 }
 0xc32   :  { %v2617_v22 = vpop.f32.mrb[28].mxu1 }
 0xc33   :  { %v2621_v40 = vsub.f32 %v2542_v35, %v2617_v22  ;;  %v3638_v24 = vpop.f32.mrb[29].mxu1 }
 0xc35   :  { %v2622_v38 = vmul.f32 %v2621_v40, %v2621_v40 }
 0xc37   :  { %3640 = vmatpush3.msk.msra.mxu1 %vm587_vm1, %v2622_v38 }
 0xc38   :  { %3642 = vmatmul.mubr.msk.f32.vlgmr.msra.gmra.mrb[30].mxu1 %vm1804_vm4, %v4809_v55  ;;  %3859 = vmatprep.subr.bf16.mxu1 %v3887_v42  ;;  %v2715_v55 = vld [vmem:[%s5052_s16 + $0x10] sm:$0xff] }
 0xc39   :  { %3660 = vmatprep.mubr.msk.f32.mxu1 %vm3888_vm2, %v3889_v41  ;;  %3861 = vmatpush3.bf16.msra.mxu1 %v3860_v43  ;;  %v2716_v41 = vld [vmem:[%s5052_s16 + $0x18] sm:$0xff] }
 0xc3a   :  { %3862 = vmatprep.subr.bf16.mxu1 %v3887_v42  ;;  %v3863_v20 = vpack.c.bf16 %v2716_v41, %v2715_v55 }
 0xc3d   :  { %3864 = vmatpush3.bf16.msra.mxu1 %v3863_v20 }
 0xc3e   :  { %3865 = vmatprep.subr.bf16.mxu1 %v3887_v42 }
 0xc41   :  { %3867 = vmatpush3.bf16.msra.mxu1 %v3866_v46 }
 0xc42   :  { %3868 = vmatprep.subr.bf16.mxu1 %v3887_v42 }
 0xc45   :  { %3870 = vmatpush3.bf16.msra.mxu1 %v3869_v33 }
 0xd0b   :  { %v2692_v50 = vpop.f32.mrb[30].mxu1 }
 0xd0c   :  { %v2693_v37 = vadd.f32 1e-05, %v2692_v50  ;;  %v3643_v51 = vpop.f32.mrb[31].mxu1 }
 0xd0e   :  { %3884 = vrsqrt.f32 %v2693_v37 }
 0xd18   :  { %v3885_v54 = vpop.eup %3884 }
 0xd19   :  { %v2697_v42 = vmul.f32 %v3885_v54, %v2621_v40 }
 0xd1b   :  { %v2704_v29 = vmul.f32 %v2964_v56, %v2697_v42 }
 0xd1d   :  { %v2711_v59 = vadd.f32 %v2965_v45, %v2704_v29 }
 0xd1f   :  { %v2712_v47 = vmax.f32 %v2711_v59, 0.0 }
 0xd21   :  { %3661 = vmatmul.mubr.msk.f32.vlgmr.msra.gmra.mrb[32].mxu1 %vm1728_vm3, %v2712_v47 }
 0xdf4   :  { %v2797_v63 = vpop.f32.mrb[32].mxu1 }
 0xdf5   :  { %v2798_v0 = vadd.f32 %v2966_v61, %v2797_v63  ;;  %v3662_v53 = vpop.f32.mrb[33].mxu1 }
 0xdf7   :  { %2801 = vst [vmem:[%s5056_s19] sm:$0xf] %v2798_v0 }

</bundles_post_ra>
